<compile_context>
chip_gen: v5e
topology: v5e:2x2
jax: 0.10.0
libtpu: 0.0.40
codegen_flags: <defaults>
</compile_context>

<pallas_src>
import functools

import jax
import jax.numpy as jnp
from jax.experimental import pallas as pl
from jax.experimental.pallas import tpu as pltpu

_HIGHEST = jax.lax.Precision.HIGHEST


def _fplstm_kernel(x_ref, wih_ref, whh_ref, b_ref,
                   w1_ref, b1_ref, w2_ref, b2_ref,
                   out_ref, *, T, Bp):
    """Whole FPLSTM forward in one invocation.

    x_ref:   (T*Bp, I)   -- all timesteps, batch padded to Bp
    wih_ref: (I, 4H)     whh_ref: (H, 4H)     b_ref: (1, 4H)   (b_ih + b_hh)
    w1_ref:  (H, F1)     b1_ref:  (1, F1)
    w2_ref:  (F1, Cp)    b2_ref:  (1, Cp)     (Cp = lane-padded n_classes)
    out_ref: (Bp, Cp)
    """
    H = whh_ref.shape[0]

    # (1) Input projection for ALL timesteps in one MXU pass (M = T*Bp),
    #     with the bias folded in once (hoisted out of the recurrence).
    xw = (jnp.dot(x_ref[...], wih_ref[...],
                  preferred_element_type=jnp.float32, precision=_HIGHEST)
          + b_ref[...])                                       # (T*Bp, 4H)

    whh = whh_ref[...]                                        # (H, 4H), loaded once

    # (2) Recurrence: h/c carried in vregs, T small & static -> full static unroll.
    h = jnp.zeros((Bp, H), jnp.float32)
    c = jnp.zeros((Bp, H), jnp.float32)
    for t in range(T):
        gates = (xw[t * Bp:(t + 1) * Bp]
                 + jnp.dot(h, whh, preferred_element_type=jnp.float32,
                           precision=_HIGHEST))               # (Bp, 4H)
        # Gate order [i, f, g, o]; with H=32 the 4H axis is exactly one 128-lane
        # vreg, so these sub-vreg lane extracts are cheap.
        i_g = jax.nn.sigmoid(gates[:, 0 * H:1 * H])
        f_g = jax.nn.sigmoid(gates[:, 1 * H:2 * H])
        g_g = jnp.tanh(gates[:, 2 * H:3 * H])
        o_g = jax.nn.sigmoid(gates[:, 3 * H:4 * H])
        c = f_g * c + i_g * g_g
        h = o_g * jnp.tanh(c)

    # (3) Classifier head on the final hidden state (dropout = identity in eval).
    fc1 = jnp.maximum(
        jnp.dot(h, w1_ref[...], preferred_element_type=jnp.float32,
                precision=_HIGHEST) + b1_ref[...],
        0.0)
    out_ref[...] = (jnp.dot(fc1, w2_ref[...], preferred_element_type=jnp.float32,
                            precision=_HIGHEST)
                    + b2_ref[...]).astype(out_ref.dtype)


@jax.jit
def fplstm_forward(x, params):
    """x: (T, B, input_size) float32.  Returns (B, n_classes) float32."""
    T, B, I = x.shape
    wih, whh, b, w1, b1, w2, b2 = (params["w_ih"], params["w_hh"], params["b"],
                                   params["w1"], params["b1"],
                                   params["w2"], params["b2"])
    H = whh.shape[0]
    F1 = w1.shape[1]
    C = w2.shape[1]

    # Pad batch to a full sublane set and the output to a full 128-lane vreg.
    Bp = max(8, -(-B // 8) * 8)
    Cp = max(128, -(-C // 128) * 128)

    x_p = x if Bp == B else jnp.zeros((T, Bp, I), x.dtype).at[:, :B, :].set(x)
    w2_p = w2 if Cp == C else jnp.zeros((F1, Cp), w2.dtype).at[:, :C].set(w2)
    b2_p = b2 if Cp == C else jnp.zeros((1, Cp), b2.dtype).at[:, :C].set(b2)

    # Merge (T, Bp) in the wrapper so the in-kernel x-projection is one matmul.
    x2d = x_p.reshape(T * Bp, I)

    vmem_spec = pl.BlockSpec(memory_space=pltpu.MemorySpace.VMEM)

    out_p = pl.pallas_call(
        functools.partial(_fplstm_kernel, T=T, Bp=Bp),
        out_shape=jax.ShapeDtypeStruct((Bp, Cp), jnp.float32),
        # No grid: everything (inputs, weights, output) is whole-array resident
        # in VMEM for the single invocation.  At these sizes (~40 KB total) this
        # is far under any generation's VMEM limit (incl. v7x's 64 MiB).
        in_specs=[vmem_spec] * 8,
        out_specs=vmem_spec,
    )(x2d, wih, whh, b, w1, b1, w2_p, b2_p)

    return out_p[:B, :C]


def init_params(key, input_size, lstm_size, fc1_size, n_classes):
    """Deterministic synthetic parameters (PyTorch-style uniform fan-in init)."""
    ks = jax.random.split(key, 9)
    H = lstm_size
    s_lstm = 1.0 / jnp.sqrt(H)
    s_fc1 = 1.0 / jnp.sqrt(H)
    s_fc2 = 1.0 / jnp.sqrt(fc1_size)
    u = lambda k, shape, s: jax.random.uniform(k, shape, jnp.float32, -s, s)
    b_ih = u(ks[2], (4 * H,), s_lstm)
    b_hh = u(ks[3], (4 * H,), s_lstm)
    return {
        "w_ih": u(ks[0], (input_size, 4 * H), s_lstm),   # gate order [i, f, g, o]
        "w_hh": u(ks[1], (H, 4 * H), s_lstm),
        "b": (b_ih + b_hh).reshape(1, 4 * H),
        "w1": u(ks[4], (H, fc1_size), s_fc1),
        "b1": u(ks[5], (1, fc1_size), s_fc1),
        "w2": u(ks[6], (fc1_size, n_classes), s_fc2),
        "b2": u(ks[7], (1, n_classes), s_fc2),
    }


def fplstm_reference(x, params):
    """Pure-JAX reference (mirrors torch.nn.LSTM + fc head in eval mode)."""
    T, B, I = x.shape
    H = params["w_hh"].shape[0]
    dot = functools.partial(jnp.dot, precision=_HIGHEST)

    def step(carry, x_t):
        h, c = carry
        gates = dot(x_t, params["w_ih"]) + dot(h, params["w_hh"]) + params["b"]
        i = jax.nn.sigmoid(gates[:, 0 * H:1 * H])
        f = jax.nn.sigmoid(gates[:, 1 * H:2 * H])
        g = jnp.tanh(gates[:, 2 * H:3 * H])
        o = jax.nn.sigmoid(gates[:, 3 * H:4 * H])
        c = f * c + i * g
        h = o * jnp.tanh(c)
        return (h, c), None

    (h, _), _ = jax.lax.scan(
        step, (jnp.zeros((B, H), jnp.float32), jnp.zeros((B, H), jnp.float32)), x)
    fc1 = jnp.maximum(dot(h, params["w1"]) + params["b1"], 0.0)
    return dot(fc1, params["w2"]) + params["b2"]


if __name__ == "__main__":
    # Small shapes implied by the module's forward: x is (seq, batch, input_size).
    seq_len, batch, input_size = 8, 4, 16
    lstm_size, fc1_size, n_classes = 32, 64, 2

    key = jax.random.PRNGKey(0)
    k_x, k_p = jax.random.split(key)
    x = jax.random.normal(k_x, (seq_len, batch, input_size), jnp.float32)
    params = init_params(k_p, input_size, lstm_size, fc1_size, n_classes)

    out = fplstm_forward(x, params)
    out = jax.block_until_ready(out)

    ref = fplstm_reference(x, params)
    assert out.shape == (batch, n_classes)
    err = float(jnp.max(jnp.abs(out - ref)))
    assert err < 1e-3, f"mismatch vs. JAX reference (max abs err = {err})"

    print("KERNEL_OK")
</pallas_src>

<mosaic_0001>
module attributes {stable_mosaic.version = 11 : i64} {
  func.func @_fplstm_kernel(%arg0: memref<64x16xf32, #tpu.memory_space<vmem>>, %arg1: memref<16x128xf32, #tpu.memory_space<vmem>>, %arg2: memref<32x128xf32, #tpu.memory_space<vmem>>, %arg3: memref<1x128xf32, #tpu.memory_space<vmem>>, %arg4: memref<32x64xf32, #tpu.memory_space<vmem>>, %arg5: memref<1x64xf32, #tpu.memory_space<vmem>>, %arg6: memref<64x128xf32, #tpu.memory_space<vmem>>, %arg7: memref<1x128xf32, #tpu.memory_space<vmem>>, %arg8: memref<8x128xf32, #tpu.memory_space<vmem>>) attributes {dimension_semantics = [], scalar_prefetch = 0 : i64, scratch_operands = 0 : i64, tpu.core_type = #tpu.core_type<tc>} {
    %c0 = arith.constant 0 : index
    %c0_0 = arith.constant 0 : index
    %0 = vector.load %arg0[%c0, %c0_0] : memref<64x16xf32, #tpu.memory_space<vmem>>, vector<64x16xf32>
    %c0_1 = arith.constant 0 : index
    %c0_2 = arith.constant 0 : index
    %1 = vector.load %arg1[%c0_1, %c0_2] : memref<16x128xf32, #tpu.memory_space<vmem>>, vector<16x128xf32>
    %cst = arith.constant dense<0.000000e+00> : vector<64x128xf32>
    %2 = tpu.matmul %0, %1, %cst {dimension_numbers = #tpu.dot_dimension_numbers<[1], [0], [0], [1], [0, 0, 1, 1], [], []>, precision = #tpu.contract_precision<fp32>} : vector<64x16xf32>, vector<16x128xf32>, vector<64x128xf32> -> vector<64x128xf32>
    %c0_3 = arith.constant 0 : index
    %c0_4 = arith.constant 0 : index
    %3 = vector.load %arg3[%c0_3, %c0_4] : memref<1x128xf32, #tpu.memory_space<vmem>>, vector<1x128xf32>
    %4 = vector.broadcast %3 : vector<1x128xf32> to vector<64x128xf32>
    %5 = arith.addf %2, %4 : vector<64x128xf32>
    %c0_5 = arith.constant 0 : index
    %c0_6 = arith.constant 0 : index
    %6 = vector.load %arg2[%c0_5, %c0_6] : memref<32x128xf32, #tpu.memory_space<vmem>>, vector<32x128xf32>
    %cst_7 = arith.constant 0.000000e+00 : f32
    %7 = vector.broadcast %cst_7 : f32 to vector<8x32xf32>
    %cst_8 = arith.constant 0.000000e+00 : f32
    %8 = vector.broadcast %cst_8 : f32 to vector<8x32xf32>
    %9 = vector.extract_strided_slice %5 {offsets = [0, 0], sizes = [8, 128], strides = [1, 1]} : vector<64x128xf32> to vector<8x128xf32>
    %cst_9 = arith.constant dense<0.000000e+00> : vector<8x128xf32>
    %10 = tpu.matmul %7, %6, %cst_9 {dimension_numbers = #tpu.dot_dimension_numbers<[1], [0], [0], [1], [0, 0, 1, 1], [], []>, precision = #tpu.contract_precision<fp32>} : vector<8x32xf32>, vector<32x128xf32>, vector<8x128xf32> -> vector<8x128xf32>
    %11 = arith.addf %9, %10 : vector<8x128xf32>
    %12 = vector.extract_strided_slice %11 {offsets = [0, 0], sizes = [8, 32], strides = [1, 1]} : vector<8x128xf32> to vector<8x32xf32>
    %13 = arith.negf %12 : vector<8x32xf32>
    %14 = math.exp %13 : vector<8x32xf32>
    %cst_10 = arith.constant 1.000000e+00 : f32
    %15 = vector.broadcast %cst_10 : f32 to vector<8x32xf32>
    %16 = arith.addf %15, %14 : vector<8x32xf32>
    %17 = arith.divf %15, %16 : vector<8x32xf32>
    %18 = vector.extract_strided_slice %11 {offsets = [0, 32], sizes = [8, 32], strides = [1, 1]} : vector<8x128xf32> to vector<8x32xf32>
    %19 = arith.negf %18 : vector<8x32xf32>
    %20 = math.exp %19 : vector<8x32xf32>
    %cst_11 = arith.constant 1.000000e+00 : f32
    %21 = vector.broadcast %cst_11 : f32 to vector<8x32xf32>
    %22 = arith.addf %21, %20 : vector<8x32xf32>
    %23 = arith.divf %21, %22 : vector<8x32xf32>
    %24 = vector.extract_strided_slice %11 {offsets = [0, 64], sizes = [8, 32], strides = [1, 1]} : vector<8x128xf32> to vector<8x32xf32>
    %25 = math.tanh %24 : vector<8x32xf32>
    %26 = vector.extract_strided_slice %11 {offsets = [0, 96], sizes = [8, 32], strides = [1, 1]} : vector<8x128xf32> to vector<8x32xf32>
    %27 = arith.negf %26 : vector<8x32xf32>
    %28 = math.exp %27 : vector<8x32xf32>
    %cst_12 = arith.constant 1.000000e+00 : f32
    %29 = vector.broadcast %cst_12 : f32 to vector<8x32xf32>
    %30 = arith.addf %29, %28 : vector<8x32xf32>
    %31 = arith.divf %29, %30 : vector<8x32xf32>
    %32 = arith.mulf %23, %8 : vector<8x32xf32>
    %33 = arith.mulf %17, %25 : vector<8x32xf32>
    %34 = arith.addf %32, %33 : vector<8x32xf32>
    %35 = math.tanh %34 : vector<8x32xf32>
    %36 = arith.mulf %31, %35 : vector<8x32xf32>
    %37 = vector.extract_strided_slice %5 {offsets = [8, 0], sizes = [8, 128], strides = [1, 1]} : vector<64x128xf32> to vector<8x128xf32>
    %cst_13 = arith.constant dense<0.000000e+00> : vector<8x128xf32>
    %38 = tpu.matmul %36, %6, %cst_13 {dimension_numbers = #tpu.dot_dimension_numbers<[1], [0], [0], [1], [0, 0, 1, 1], [], []>, precision = #tpu.contract_precision<fp32>} : vector<8x32xf32>, vector<32x128xf32>, vector<8x128xf32> -> vector<8x128xf32>
    %39 = arith.addf %37, %38 : vector<8x128xf32>
    %40 = vector.extract_strided_slice %39 {offsets = [0, 0], sizes = [8, 32], strides = [1, 1]} : vector<8x128xf32> to vector<8x32xf32>
    %41 = arith.negf %40 : vector<8x32xf32>
    %42 = math.exp %41 : vector<8x32xf32>
    %cst_14 = arith.constant 1.000000e+00 : f32
    %43 = vector.broadcast %cst_14 : f32 to vector<8x32xf32>
    %44 = arith.addf %43, %42 : vector<8x32xf32>
    %45 = arith.divf %43, %44 : vector<8x32xf32>
    %46 = vector.extract_strided_slice %39 {offsets = [0, 32], sizes = [8, 32], strides = [1, 1]} : vector<8x128xf32> to vector<8x32xf32>
    %47 = arith.negf %46 : vector<8x32xf32>
    %48 = math.exp %47 : vector<8x32xf32>
    %cst_15 = arith.constant 1.000000e+00 : f32
    %49 = vector.broadcast %cst_15 : f32 to vector<8x32xf32>
    %50 = arith.addf %49, %48 : vector<8x32xf32>
    %51 = arith.divf %49, %50 : vector<8x32xf32>
    %52 = vector.extract_strided_slice %39 {offsets = [0, 64], sizes = [8, 32], strides = [1, 1]} : vector<8x128xf32> to vector<8x32xf32>
    %53 = math.tanh %52 : vector<8x32xf32>
    %54 = vector.extract_strided_slice %39 {offsets = [0, 96], sizes = [8, 32], strides = [1, 1]} : vector<8x128xf32> to vector<8x32xf32>
    %55 = arith.negf %54 : vector<8x32xf32>
    %56 = math.exp %55 : vector<8x32xf32>
    %cst_16 = arith.constant 1.000000e+00 : f32
    %57 = vector.broadcast %cst_16 : f32 to vector<8x32xf32>
    %58 = arith.addf %57, %56 : vector<8x32xf32>
    %59 = arith.divf %57, %58 : vector<8x32xf32>
    %60 = arith.mulf %51, %34 : vector<8x32xf32>
    %61 = arith.mulf %45, %53 : vector<8x32xf32>
    %62 = arith.addf %60, %61 : vector<8x32xf32>
    %63 = math.tanh %62 : vector<8x32xf32>
    %64 = arith.mulf %59, %63 : vector<8x32xf32>
    %65 = vector.extract_strided_slice %5 {offsets = [16, 0], sizes = [8, 128], strides = [1, 1]} : vector<64x128xf32> to vector<8x128xf32>
    %cst_17 = arith.constant dense<0.000000e+00> : vector<8x128xf32>
    %66 = tpu.matmul %64, %6, %cst_17 {dimension_numbers = #tpu.dot_dimension_numbers<[1], [0], [0], [1], [0, 0, 1, 1], [], []>, precision = #tpu.contract_precision<fp32>} : vector<8x32xf32>, vector<32x128xf32>, vector<8x128xf32> -> vector<8x128xf32>
    %67 = arith.addf %65, %66 : vector<8x128xf32>
    %68 = vector.extract_strided_slice %67 {offsets = [0, 0], sizes = [8, 32], strides = [1, 1]} : vector<8x128xf32> to vector<8x32xf32>
    %69 = arith.negf %68 : vector<8x32xf32>
    %70 = math.exp %69 : vector<8x32xf32>
    %cst_18 = arith.constant 1.000000e+00 : f32
    %71 = vector.broadcast %cst_18 : f32 to vector<8x32xf32>
    %72 = arith.addf %71, %70 : vector<8x32xf32>
    %73 = arith.divf %71, %72 : vector<8x32xf32>
    %74 = vector.extract_strided_slice %67 {offsets = [0, 32], sizes = [8, 32], strides = [1, 1]} : vector<8x128xf32> to vector<8x32xf32>
    %75 = arith.negf %74 : vector<8x32xf32>
    %76 = math.exp %75 : vector<8x32xf32>
    %cst_19 = arith.constant 1.000000e+00 : f32
    %77 = vector.broadcast %cst_19 : f32 to vector<8x32xf32>
    %78 = arith.addf %77, %76 : vector<8x32xf32>
    %79 = arith.divf %77, %78 : vector<8x32xf32>
    %80 = vector.extract_strided_slice %67 {offsets = [0, 64], sizes = [8, 32], strides = [1, 1]} : vector<8x128xf32> to vector<8x32xf32>
    %81 = math.tanh %80 : vector<8x32xf32>
    %82 = vector.extract_strided_slice %67 {offsets = [0, 96], sizes = [8, 32], strides = [1, 1]} : vector<8x128xf32> to vector<8x32xf32>
    %83 = arith.negf %82 : vector<8x32xf32>
    %84 = math.exp %83 : vector<8x32xf32>
    %cst_20 = arith.constant 1.000000e+00 : f32
    %85 = vector.broadcast %cst_20 : f32 to vector<8x32xf32>
    %86 = arith.addf %85, %84 : vector<8x32xf32>
    %87 = arith.divf %85, %86 : vector<8x32xf32>
    %88 = arith.mulf %79, %62 : vector<8x32xf32>
    %89 = arith.mulf %73, %81 : vector<8x32xf32>
    %90 = arith.addf %88, %89 : vector<8x32xf32>
    %91 = math.tanh %90 : vector<8x32xf32>
    %92 = arith.mulf %87, %91 : vector<8x32xf32>
    %93 = vector.extract_strided_slice %5 {offsets = [24, 0], sizes = [8, 128], strides = [1, 1]} : vector<64x128xf32> to vector<8x128xf32>
    %cst_21 = arith.constant dense<0.000000e+00> : vector<8x128xf32>
    %94 = tpu.matmul %92, %6, %cst_21 {dimension_numbers = #tpu.dot_dimension_numbers<[1], [0], [0], [1], [0, 0, 1, 1], [], []>, precision = #tpu.contract_precision<fp32>} : vector<8x32xf32>, vector<32x128xf32>, vector<8x128xf32> -> vector<8x128xf32>
    %95 = arith.addf %93, %94 : vector<8x128xf32>
    %96 = vector.extract_strided_slice %95 {offsets = [0, 0], sizes = [8, 32], strides = [1, 1]} : vector<8x128xf32> to vector<8x32xf32>
    %97 = arith.negf %96 : vector<8x32xf32>
    %98 = math.exp %97 : vector<8x32xf32>
    %cst_22 = arith.constant 1.000000e+00 : f32
    %99 = vector.broadcast %cst_22 : f32 to vector<8x32xf32>
    %100 = arith.addf %99, %98 : vector<8x32xf32>
    %101 = arith.divf %99, %100 : vector<8x32xf32>
    %102 = vector.extract_strided_slice %95 {offsets = [0, 32], sizes = [8, 32], strides = [1, 1]} : vector<8x128xf32> to vector<8x32xf32>
    %103 = arith.negf %102 : vector<8x32xf32>
    %104 = math.exp %103 : vector<8x32xf32>
    %cst_23 = arith.constant 1.000000e+00 : f32
    %105 = vector.broadcast %cst_23 : f32 to vector<8x32xf32>
    %106 = arith.addf %105, %104 : vector<8x32xf32>
    %107 = arith.divf %105, %106 : vector<8x32xf32>
    %108 = vector.extract_strided_slice %95 {offsets = [0, 64], sizes = [8, 32], strides = [1, 1]} : vector<8x128xf32> to vector<8x32xf32>
    %109 = math.tanh %108 : vector<8x32xf32>
    %110 = vector.extract_strided_slice %95 {offsets = [0, 96], sizes = [8, 32], strides = [1, 1]} : vector<8x128xf32> to vector<8x32xf32>
    %111 = arith.negf %110 : vector<8x32xf32>
    %112 = math.exp %111 : vector<8x32xf32>
    %cst_24 = arith.constant 1.000000e+00 : f32
    %113 = vector.broadcast %cst_24 : f32 to vector<8x32xf32>
    %114 = arith.addf %113, %112 : vector<8x32xf32>
    %115 = arith.divf %113, %114 : vector<8x32xf32>
    %116 = arith.mulf %107, %90 : vector<8x32xf32>
    %117 = arith.mulf %101, %109 : vector<8x32xf32>
    %118 = arith.addf %116, %117 : vector<8x32xf32>
    %119 = math.tanh %118 : vector<8x32xf32>
    %120 = arith.mulf %115, %119 : vector<8x32xf32>
    %121 = vector.extract_strided_slice %5 {offsets = [32, 0], sizes = [8, 128], strides = [1, 1]} : vector<64x128xf32> to vector<8x128xf32>
    %cst_25 = arith.constant dense<0.000000e+00> : vector<8x128xf32>
    %122 = tpu.matmul %120, %6, %cst_25 {dimension_numbers = #tpu.dot_dimension_numbers<[1], [0], [0], [1], [0, 0, 1, 1], [], []>, precision = #tpu.contract_precision<fp32>} : vector<8x32xf32>, vector<32x128xf32>, vector<8x128xf32> -> vector<8x128xf32>
    %123 = arith.addf %121, %122 : vector<8x128xf32>
    %124 = vector.extract_strided_slice %123 {offsets = [0, 0], sizes = [8, 32], strides = [1, 1]} : vector<8x128xf32> to vector<8x32xf32>
    %125 = arith.negf %124 : vector<8x32xf32>
    %126 = math.exp %125 : vector<8x32xf32>
    %cst_26 = arith.constant 1.000000e+00 : f32
    %127 = vector.broadcast %cst_26 : f32 to vector<8x32xf32>
    %128 = arith.addf %127, %126 : vector<8x32xf32>
    %129 = arith.divf %127, %128 : vector<8x32xf32>
    %130 = vector.extract_strided_slice %123 {offsets = [0, 32], sizes = [8, 32], strides = [1, 1]} : vector<8x128xf32> to vector<8x32xf32>
    %131 = arith.negf %130 : vector<8x32xf32>
    %132 = math.exp %131 : vector<8x32xf32>
    %cst_27 = arith.constant 1.000000e+00 : f32
    %133 = vector.broadcast %cst_27 : f32 to vector<8x32xf32>
    %134 = arith.addf %133, %132 : vector<8x32xf32>
    %135 = arith.divf %133, %134 : vector<8x32xf32>
    %136 = vector.extract_strided_slice %123 {offsets = [0, 64], sizes = [8, 32], strides = [1, 1]} : vector<8x128xf32> to vector<8x32xf32>
    %137 = math.tanh %136 : vector<8x32xf32>
    %138 = vector.extract_strided_slice %123 {offsets = [0, 96], sizes = [8, 32], strides = [1, 1]} : vector<8x128xf32> to vector<8x32xf32>
    %139 = arith.negf %138 : vector<8x32xf32>
    %140 = math.exp %139 : vector<8x32xf32>
    %cst_28 = arith.constant 1.000000e+00 : f32
    %141 = vector.broadcast %cst_28 : f32 to vector<8x32xf32>
    %142 = arith.addf %141, %140 : vector<8x32xf32>
    %143 = arith.divf %141, %142 : vector<8x32xf32>
    %144 = arith.mulf %135, %118 : vector<8x32xf32>
    %145 = arith.mulf %129, %137 : vector<8x32xf32>
    %146 = arith.addf %144, %145 : vector<8x32xf32>
    %147 = math.tanh %146 : vector<8x32xf32>
    %148 = arith.mulf %143, %147 : vector<8x32xf32>
    %149 = vector.extract_strided_slice %5 {offsets = [40, 0], sizes = [8, 128], strides = [1, 1]} : vector<64x128xf32> to vector<8x128xf32>
    %cst_29 = arith.constant dense<0.000000e+00> : vector<8x128xf32>
    %150 = tpu.matmul %148, %6, %cst_29 {dimension_numbers = #tpu.dot_dimension_numbers<[1], [0], [0], [1], [0, 0, 1, 1], [], []>, precision = #tpu.contract_precision<fp32>} : vector<8x32xf32>, vector<32x128xf32>, vector<8x128xf32> -> vector<8x128xf32>
    %151 = arith.addf %149, %150 : vector<8x128xf32>
    %152 = vector.extract_strided_slice %151 {offsets = [0, 0], sizes = [8, 32], strides = [1, 1]} : vector<8x128xf32> to vector<8x32xf32>
    %153 = arith.negf %152 : vector<8x32xf32>
    %154 = math.exp %153 : vector<8x32xf32>
    %cst_30 = arith.constant 1.000000e+00 : f32
    %155 = vector.broadcast %cst_30 : f32 to vector<8x32xf32>
    %156 = arith.addf %155, %154 : vector<8x32xf32>
    %157 = arith.divf %155, %156 : vector<8x32xf32>
    %158 = vector.extract_strided_slice %151 {offsets = [0, 32], sizes = [8, 32], strides = [1, 1]} : vector<8x128xf32> to vector<8x32xf32>
    %159 = arith.negf %158 : vector<8x32xf32>
    %160 = math.exp %159 : vector<8x32xf32>
    %cst_31 = arith.constant 1.000000e+00 : f32
    %161 = vector.broadcast %cst_31 : f32 to vector<8x32xf32>
    %162 = arith.addf %161, %160 : vector<8x32xf32>
    %163 = arith.divf %161, %162 : vector<8x32xf32>
    %164 = vector.extract_strided_slice %151 {offsets = [0, 64], sizes = [8, 32], strides = [1, 1]} : vector<8x128xf32> to vector<8x32xf32>
    %165 = math.tanh %164 : vector<8x32xf32>
    %166 = vector.extract_strided_slice %151 {offsets = [0, 96], sizes = [8, 32], strides = [1, 1]} : vector<8x128xf32> to vector<8x32xf32>
    %167 = arith.negf %166 : vector<8x32xf32>
    %168 = math.exp %167 : vector<8x32xf32>
    %cst_32 = arith.constant 1.000000e+00 : f32
    %169 = vector.broadcast %cst_32 : f32 to vector<8x32xf32>
    %170 = arith.addf %169, %168 : vector<8x32xf32>
    %171 = arith.divf %169, %170 : vector<8x32xf32>
    %172 = arith.mulf %163, %146 : vector<8x32xf32>
    %173 = arith.mulf %157, %165 : vector<8x32xf32>
    %174 = arith.addf %172, %173 : vector<8x32xf32>
    %175 = math.tanh %174 : vector<8x32xf32>
    %176 = arith.mulf %171, %175 : vector<8x32xf32>
    %177 = vector.extract_strided_slice %5 {offsets = [48, 0], sizes = [8, 128], strides = [1, 1]} : vector<64x128xf32> to vector<8x128xf32>
    %cst_33 = arith.constant dense<0.000000e+00> : vector<8x128xf32>
    %178 = tpu.matmul %176, %6, %cst_33 {dimension_numbers = #tpu.dot_dimension_numbers<[1], [0], [0], [1], [0, 0, 1, 1], [], []>, precision = #tpu.contract_precision<fp32>} : vector<8x32xf32>, vector<32x128xf32>, vector<8x128xf32> -> vector<8x128xf32>
    %179 = arith.addf %177, %178 : vector<8x128xf32>
    %180 = vector.extract_strided_slice %179 {offsets = [0, 0], sizes = [8, 32], strides = [1, 1]} : vector<8x128xf32> to vector<8x32xf32>
    %181 = arith.negf %180 : vector<8x32xf32>
    %182 = math.exp %181 : vector<8x32xf32>
    %cst_34 = arith.constant 1.000000e+00 : f32
    %183 = vector.broadcast %cst_34 : f32 to vector<8x32xf32>
    %184 = arith.addf %183, %182 : vector<8x32xf32>
    %185 = arith.divf %183, %184 : vector<8x32xf32>
    %186 = vector.extract_strided_slice %179 {offsets = [0, 32], sizes = [8, 32], strides = [1, 1]} : vector<8x128xf32> to vector<8x32xf32>
    %187 = arith.negf %186 : vector<8x32xf32>
    %188 = math.exp %187 : vector<8x32xf32>
    %cst_35 = arith.constant 1.000000e+00 : f32
    %189 = vector.broadcast %cst_35 : f32 to vector<8x32xf32>
    %190 = arith.addf %189, %188 : vector<8x32xf32>
    %191 = arith.divf %189, %190 : vector<8x32xf32>
    %192 = vector.extract_strided_slice %179 {offsets = [0, 64], sizes = [8, 32], strides = [1, 1]} : vector<8x128xf32> to vector<8x32xf32>
    %193 = math.tanh %192 : vector<8x32xf32>
    %194 = vector.extract_strided_slice %179 {offsets = [0, 96], sizes = [8, 32], strides = [1, 1]} : vector<8x128xf32> to vector<8x32xf32>
    %195 = arith.negf %194 : vector<8x32xf32>
    %196 = math.exp %195 : vector<8x32xf32>
    %cst_36 = arith.constant 1.000000e+00 : f32
    %197 = vector.broadcast %cst_36 : f32 to vector<8x32xf32>
    %198 = arith.addf %197, %196 : vector<8x32xf32>
    %199 = arith.divf %197, %198 : vector<8x32xf32>
    %200 = arith.mulf %191, %174 : vector<8x32xf32>
    %201 = arith.mulf %185, %193 : vector<8x32xf32>
    %202 = arith.addf %200, %201 : vector<8x32xf32>
    %203 = math.tanh %202 : vector<8x32xf32>
    %204 = arith.mulf %199, %203 : vector<8x32xf32>
    %205 = vector.extract_strided_slice %5 {offsets = [56, 0], sizes = [8, 128], strides = [1, 1]} : vector<64x128xf32> to vector<8x128xf32>
    %cst_37 = arith.constant dense<0.000000e+00> : vector<8x128xf32>
    %206 = tpu.matmul %204, %6, %cst_37 {dimension_numbers = #tpu.dot_dimension_numbers<[1], [0], [0], [1], [0, 0, 1, 1], [], []>, precision = #tpu.contract_precision<fp32>} : vector<8x32xf32>, vector<32x128xf32>, vector<8x128xf32> -> vector<8x128xf32>
    %207 = arith.addf %205, %206 : vector<8x128xf32>
    %208 = vector.extract_strided_slice %207 {offsets = [0, 0], sizes = [8, 32], strides = [1, 1]} : vector<8x128xf32> to vector<8x32xf32>
    %209 = arith.negf %208 : vector<8x32xf32>
    %210 = math.exp %209 : vector<8x32xf32>
    %cst_38 = arith.constant 1.000000e+00 : f32
    %211 = vector.broadcast %cst_38 : f32 to vector<8x32xf32>
    %212 = arith.addf %211, %210 : vector<8x32xf32>
    %213 = arith.divf %211, %212 : vector<8x32xf32>
    %214 = vector.extract_strided_slice %207 {offsets = [0, 32], sizes = [8, 32], strides = [1, 1]} : vector<8x128xf32> to vector<8x32xf32>
    %215 = arith.negf %214 : vector<8x32xf32>
    %216 = math.exp %215 : vector<8x32xf32>
    %cst_39 = arith.constant 1.000000e+00 : f32
    %217 = vector.broadcast %cst_39 : f32 to vector<8x32xf32>
    %218 = arith.addf %217, %216 : vector<8x32xf32>
    %219 = arith.divf %217, %218 : vector<8x32xf32>
    %220 = vector.extract_strided_slice %207 {offsets = [0, 64], sizes = [8, 32], strides = [1, 1]} : vector<8x128xf32> to vector<8x32xf32>
    %221 = math.tanh %220 : vector<8x32xf32>
    %222 = vector.extract_strided_slice %207 {offsets = [0, 96], sizes = [8, 32], strides = [1, 1]} : vector<8x128xf32> to vector<8x32xf32>
    %223 = arith.negf %222 : vector<8x32xf32>
    %224 = math.exp %223 : vector<8x32xf32>
    %cst_40 = arith.constant 1.000000e+00 : f32
    %225 = vector.broadcast %cst_40 : f32 to vector<8x32xf32>
    %226 = arith.addf %225, %224 : vector<8x32xf32>
    %227 = arith.divf %225, %226 : vector<8x32xf32>
    %228 = arith.mulf %219, %202 : vector<8x32xf32>
    %229 = arith.mulf %213, %221 : vector<8x32xf32>
    %230 = arith.addf %228, %229 : vector<8x32xf32>
    %231 = math.tanh %230 : vector<8x32xf32>
    %232 = arith.mulf %227, %231 : vector<8x32xf32>
    %c0_41 = arith.constant 0 : index
    %c0_42 = arith.constant 0 : index
    %233 = vector.load %arg4[%c0_41, %c0_42] : memref<32x64xf32, #tpu.memory_space<vmem>>, vector<32x64xf32>
    %cst_43 = arith.constant dense<0.000000e+00> : vector<8x64xf32>
    %234 = tpu.matmul %232, %233, %cst_43 {dimension_numbers = #tpu.dot_dimension_numbers<[1], [0], [0], [1], [0, 0, 1, 1], [], []>, precision = #tpu.contract_precision<fp32>} : vector<8x32xf32>, vector<32x64xf32>, vector<8x64xf32> -> vector<8x64xf32>
    %c0_44 = arith.constant 0 : index
    %c0_45 = arith.constant 0 : index
    %235 = vector.load %arg5[%c0_44, %c0_45] : memref<1x64xf32, #tpu.memory_space<vmem>>, vector<1x64xf32>
    %236 = vector.broadcast %235 : vector<1x64xf32> to vector<8x64xf32>
    %237 = arith.addf %234, %236 : vector<8x64xf32>
    %cst_46 = arith.constant 0.000000e+00 : f32
    %238 = vector.broadcast %cst_46 : f32 to vector<8x64xf32>
    %239 = arith.maximumf %237, %238 : vector<8x64xf32>
    %c0_47 = arith.constant 0 : index
    %c0_48 = arith.constant 0 : index
    %240 = vector.load %arg6[%c0_47, %c0_48] : memref<64x128xf32, #tpu.memory_space<vmem>>, vector<64x128xf32>
    %cst_49 = arith.constant dense<0.000000e+00> : vector<8x128xf32>
    %241 = tpu.matmul %239, %240, %cst_49 {dimension_numbers = #tpu.dot_dimension_numbers<[1], [0], [0], [1], [0, 0, 1, 1], [], []>, precision = #tpu.contract_precision<fp32>} : vector<8x64xf32>, vector<64x128xf32>, vector<8x128xf32> -> vector<8x128xf32>
    %c0_50 = arith.constant 0 : index
    %c0_51 = arith.constant 0 : index
    %242 = vector.load %arg7[%c0_50, %c0_51] : memref<1x128xf32, #tpu.memory_space<vmem>>, vector<1x128xf32>
    %243 = vector.broadcast %242 : vector<1x128xf32> to vector<8x128xf32>
    %244 = arith.addf %241, %243 : vector<8x128xf32>
    %c0_52 = arith.constant 0 : index
    %c0_53 = arith.constant 0 : index
    %245 = vector.load %arg8[%c0_52, %c0_53] : memref<8x128xf32, #tpu.memory_space<vmem>>, vector<8x128xf32>
    tpu.vector_store %arg8[%c0_52, %c0_53], %244 {strides = array<i32>} : memref<8x128xf32, #tpu.memory_space<vmem>>, vector<8x128xf32>,
    return
  }
}

</mosaic_0001>

<bundles_post_ra>
// kernel: fplstm_forward.1
= control target key start
LH: loop header
LB: loop body
LE: loop exit
PB: predicated region body
PF: predicated region fallthrough
CT: control target
= control target key end

     0   :  { %vm43_vm0 = vcmask 130048   ;;  %s2808_s10 = smov 32   ;;  %vm448_vm5 = vcmask 261120   ;;  %s3419_s1 = inlined_call_operand.vmem [shape: f32[16,128], index: 1, kind: input, shape index: {}]   ;;  %s3420_s0 = inlined_call_operand.vmem [shape: f32[64,16], index: 0, kind: input, shape index: {}]   ;;  %s3421_s2 = inlined_call_operand.vmem [shape: f32[32,128], index: 2, kind: input, shape index: {}]   ;;  %s3422_s3 = inlined_call_operand.vmem [shape: f32[1,128], index: 3, kind: input, shape index: {}]   ;;  %s3423_s4 = inlined_call_operand.vmem [shape: f32[32,64], index: 4, kind: input, shape index: {}]   ;;  %s3424_s5 = inlined_call_operand.vmem [shape: f32[1,64], index: 5, kind: input, shape index: {}]   ;;  %s3425_s6 = inlined_call_operand.vmem [shape: f32[64,128], index: 6, kind: input, shape index: {}]   ;;  %s3426_s7 = inlined_call_operand.vmem [shape: f32[1,128], index: 7, kind: input, shape index: {}]   ;;  %s3427_s8 = inlined_call_operand.vmem [shape: f32[8,128], index: 8, kind: output, shape index: {}]  }
   0x1   :  { %v38_v0 = vld [vmem:[%s3419_s1 + $0x8] sm:$0xff]  ;;  %v37_v1 = vld [vmem:[%s3419_s1] sm:$0xff]  ;;  %v447_v6 = vld [vmem:[%s3421_s2 + $0x18] sm:$0xff] }
   0x2   :  { %v29_v2 = vld [vmem:[%s3420_s0] sm:$0xff]  ;;  %v82_v3 = vand.u32 4294901760, %v38_v0  ;;  %v2863_v4 = vand.u32 4294901760, %v37_v1  ;;  %v30_v7 = vld [vmem:[%s3420_s0 + $0x8] sm:$0xff]  ;;  %v31_v8 = vld [vmem:[%s3420_s0 + $0x10] sm:$0xff]  ;;  %v2877_v10 = vand.u32 4294901760, %v447_v6 }
   0x3   :  { %v45_v5 = vsel %vm43_vm0, %v29_v2, 0  ;;  %v48_v11 = vsel %vm43_vm0, %v30_v7, 0  ;;  %v446_v12 = vld [vmem:[%s3421_s2 + $0x10] sm:$0xff]  ;;  %v51_v18 = vsel %vm43_vm0, %v31_v8, 0  ;;  %v445_v33 = vld [vmem:[%s3421_s2 + $0x8] sm:$0xff]  ;;  %v32_v39 = vld [vmem:[%s3420_s0 + $0x18] sm:$0xff] }
   0x4   :  { %v2875_v9 = vand.u32 4294901760, %v45_v5  ;;  %v166_v13 = vsub.f32 %v38_v0, %v82_v3  ;;  %286 = vmatpush.msra.mxu3 %v82_v3  ;;  %v172_v14 = vsub.f32 %v37_v1, %v2863_v4  ;;  %83 = vmatpush.msra.mxu0 %v82_v3  ;;  %v2884_v15 = vand.u32 4294901760, %v48_v11  ;;  %v33_v51 = vld [vmem:[%s3420_s0 + $0x20] sm:$0xff]  ;;  %v34_v61 = vld [vmem:[%s3420_s0 + $0x28] sm:$0xff]  ;;  %v35_v8 = vld [vmem:[%s3420_s0 + $0x30] sm:$0xff] }
   0x5   :  { %v2888_v17 = vsub.f32 %v447_v6, %v2877_v10  ;;  %v2891_v19 = vand.u32 4294901760, %v446_v12  ;;  %v2902_v28 = vand.u32 4294901760, %v51_v18  ;;  %v2921_v40 = vand.u32 4294901760, %v445_v33  ;;  %v444_v59 = vld [vmem:[%s3421_s2] sm:$0xff] }
   0x6   :  { %v87_v16 = vsub.f32 %v45_v5, %v2875_v9  ;;  %226 = vmatpush.msra.mxu2 %v166_v13  ;;  %288 = vmatpush.msra.mxu3 %v2863_v4  ;;  %v167_v20 = vand.u32 4294901760, %v166_v13  ;;  %v173_v21 = vand.u32 4294901760, %v172_v14  ;;  %v95_v22 = vsub.f32 %v48_v11, %v2884_v15 }
   0x7   :  { %85 = vmatpush.msra.mxu0 %v2863_v4  ;;  %v2897_v24 = vand.u32 4294901760, %v2888_v17  ;;  %v2900_v25 = vsub.f32 %v446_v12, %v2891_v19  ;;  %v103_v42 = vsub.f32 %v51_v18, %v2902_v28  ;;  %v54_v44 = vsel %vm43_vm0, %v32_v39, 0 }
   0x8   :  { %v88_v23 = vand.u32 4294901760, %v87_v16  ;;  %229 = vmatpush.msra.mxu2 %v172_v14  ;;  %v168_v26 = vsub.f32 %v166_v13, %v167_v20  ;;  %v174_v27 = vsub.f32 %v172_v14, %v173_v21  ;;  %v96_v31 = vand.u32 4294901760, %v95_v22 }
   0x9   :  { %355 = vmatpush.msrb.mxu0 %v167_v20  ;;  %232 = vmatmul.f32.vlgmr.msra.gmra.mxu2 %v87_v16  ;;  %v496_v29 = vsub.f32 %v2888_v17, %v2897_v24  ;;  %v2907_v32 = vand.u32 4294901760, %v2900_v25  ;;  %v2930_v45 = vsub.f32 %v445_v33, %v2921_v40  ;;  %v104_v48 = vand.u32 4294901760, %v103_v42  ;;  %v36_v20 = vld [vmem:[%s3420_s0 + $0x38] sm:$0xff] }
   0xa   :  { %292 = vmatmul.f32.vlgmr.msra.gmra.mxu3 %v88_v23  ;;  %v89_v30 = vsub.f32 %v87_v16, %v88_v23  ;;  %465 = vmatpush.msrb.mxu2 %v2877_v10  ;;  %v169_v34 = vand.u32 4294901760, %v168_v26  ;;  %v175_v35 = vand.u32 4294901760, %v174_v27  ;;  %v97_v41 = vsub.f32 %v95_v22, %v96_v31 }
   0xb   :  { %359 = vmatpush.msrb.mxu0 %v173_v21  ;;  %v2913_v36 = vand.u32 4294901760, %v496_v29  ;;  %v502_v38 = vsub.f32 %v2900_v25, %v2907_v32  ;;  %v2935_v46 = vand.u32 4294901760, %v2930_v45  ;;  %v2938_v49 = vand.u32 4294901760, %v54_v44 }
   0xc   :  { %v90_v37 = vand.u32 4294901760, %v89_v30  ;;  %170 = vmatpush.msra.mxu1 %v169_v34  ;;  %467 = vmatpush.msrb.mxu2 %v2891_v19  ;;  %v98_v47 = vand.u32 4294901760, %v97_v41  ;;  %v105_v53 = vsub.f32 %v103_v42, %v104_v48  ;;  %v57_v55 = vsel %vm43_vm0, %v33_v51, 0 }
   0xd   :  { %498 = vmatpush.msrb.mxu3 %v2913_v36  ;;  %v2925_v43 = vand.u32 4294901760, %v502_v38  ;;  %v508_v50 = vsub.f32 %v2930_v45, %v2935_v46  ;;  %v111_v54 = vsub.f32 %v54_v44, %v2938_v49  ;;  %v2957_v58 = vand.u32 4294901760, %v57_v55 }
   0xe   :  { %91 = vmatmul.f32.vlgmr.msra.gmra.mxu0 %v90_v37  ;;  %176 = vmatpush.msra.mxu1 %v175_v35  ;;  %v106_v56 = vand.u32 4294901760, %v105_v53  ;;  %v2962_v60 = vand.u32 4294901760, %v444_v59  ;;  %v60_v1 = vsel %vm43_vm0, %v34_v61, 0  ;;  %v63_v13 = vsel %vm43_vm0, %v35_v8, 0  ;;  %v3083_v53 = vld [vmem:[%s3422_s3] ss:$0 sm:$0xff] }
   0xf   :  { %469 = vmatpush.msrb.mxu2 %v2921_v40  ;;  %178 = vmatmul.f32.vlgmr.msra.gmra.mxu1 %v2875_v9  ;;  %v2948_v52 = vand.u32 4294901760, %v508_v50  ;;  %v112_v57 = vand.u32 4294901760, %v111_v54  ;;  %v119_v0 = vsub.f32 %v57_v55, %v2957_v58  ;;  %v2983_v6 = vand.u32 4294901760, %v60_v1  ;;  %s2807_s3 = smov 64  }
  0x10   :  { %504 = vmatpush.msrb.mxu3 %v2925_v43  ;;  %408 = vmatpush.msrb.mxu1 %v82_v3  ;;  %v2969_v62 = vsub.f32 %v444_v59, %v2962_v60  ;;  %v2998_v18 = vand.u32 4294901760, %v63_v13  ;;  %v66_v23 = vsel %vm43_vm0, %v36_v20, 0  ;;  %v2806_v38 = vmov 0.0  }
  0x11   :  { %1050 = vmatpush.msra.mxu0 %v2897_v24  ;;  %237 = vmatmul.f32.gmra.mxu2 %v95_v22  ;;  %v113_v63 = vsub.f32 %v111_v54, %v112_v57  ;;  %v120_v5 = vand.u32 4294901760, %v119_v0  ;;  %v127_v12 = vsub.f32 %v60_v1, %v2983_v6  ;;  %v3008_v29 = vand.u32 4294901760, %v66_v23 }
  0x12   :  { %298 = vmatmul.f32.gmra.mxu3 %v96_v31  ;;  %410 = vmatpush.msrb.mxu1 %v2863_v4  ;;  %v2976_v2 = vand.u32 4294901760, %v2969_v62  ;;  %v135_v22 = vsub.f32 %v63_v13, %v2998_v18 }
  0x13   :  { %1054 = vmatpush.msra.mxu0 %v2907_v32  ;;  %510 = vmatpush.msrb.mxu3 %v2948_v52  ;;  %v114_v4 = vand.u32 4294901760, %v113_v63  ;;  %v121_v11 = vsub.f32 %v119_v0, %v120_v5  ;;  %v128_v16 = vand.u32 4294901760, %v127_v12  ;;  %v143_v31 = vsub.f32 %v66_v23, %v3008_v29 }
  0x14   :  { %1081 = vmatpush.msra.mxu1 %v2877_v10  ;;  %471 = vmatpush.msrb.mxu2 %v2962_v60  ;;  %v514_v3 = vsub.f32 %v2969_v62, %v2976_v2  ;;  %v136_v27 = vand.u32 4294901760, %v135_v22 }
  0x15   :  { %1058 = vmatpush.msra.mxu0 %v2935_v46  ;;  %v122_v14 = vand.u32 4294901760, %v121_v11  ;;  %v129_v21 = vsub.f32 %v127_v12, %v128_v16  ;;  %v144_v34 = vand.u32 4294901760, %v143_v31 }
  0x16   :  { %99 = vmatmul.f32.gmra.mxu0 %v98_v47  ;;  %1083 = vmatpush.msra.mxu1 %v2891_v19  ;;  %v2985_v7 = vand.u32 4294901760, %v514_v3  ;;  %v137_v30 = vsub.f32 %v135_v22, %v136_v27 }
  0x17   :  { %182 = vmatmul.f32.gmra.mxu1 %v2884_v15  ;;  %536 = vmatpush.msra.mxu2 %v2888_v17  ;;  %v130_v26 = vand.u32 4294901760, %v129_v21  ;;  %v145_v35 = vsub.f32 %v143_v31, %v144_v34 }
  0x18   :  { %1085 = vmatpush.msra.mxu1 %v2921_v40  ;;  %1062 = vmatpush.msra.mxu0 %v2976_v2  ;;  %v138_v33 = vand.u32 4294901760, %v137_v30 }
  0x19   :  { %242 = vmatmul.f32.gmra.mxu2 %v103_v42  ;;  %516 = vmatpush.msrb.mxu3 %v2985_v7  ;;  %v146_v37 = vand.u32 4294901760, %v145_v35 }
  0x1a   :  { %304 = vmatmul.f32.gmra.mxu3 %v104_v48  ;;  %1087 = vmatpush.msra.mxu1 %v2962_v60 }
  0x1b   :  { %539 = vmatpush.msra.mxu2 %v2900_v25  ;;  %565 = vmatpush.msra.mxu3 %v2877_v10 }
  0x1d   :  { %542 = vmatpush.msra.mxu2 %v2930_v45  ;;  %567 = vmatpush.msra.mxu3 %v2891_v19 }
  0x1e   :  { %107 = vmatmul.f32.gmra.mxu0 %v106_v56 }
  0x1f   :  { %186 = vmatmul.f32.gmra.mxu1 %v2902_v28  ;;  %545 = vmatpush.msra.mxu2 %v2969_v62 }
  0x20   :  { %569 = vmatpush.msra.mxu3 %v2921_v40 }
  0x21   :  { %247 = vmatmul.f32.gmra.mxu2 %v111_v54 }
  0x22   :  { %310 = vmatmul.f32.gmra.mxu3 %v112_v57 }
  0x23   :  { %571 = vmatpush.msra.mxu3 %v2962_v60 }
  0x26   :  { %115 = vmatmul.f32.gmra.mxu0 %v114_v4 }
  0x27   :  { %190 = vmatmul.f32.gmra.mxu1 %v2938_v49 }
  0x29   :  { %252 = vmatmul.f32.gmra.mxu2 %v119_v0 }
  0x2a   :  { %316 = vmatmul.f32.gmra.mxu3 %v120_v5 }
  0x2e   :  { %123 = vmatmul.f32.gmra.mxu0 %v122_v14 }
  0x2f   :  { %194 = vmatmul.f32.gmra.mxu1 %v2957_v58 }
  0x31   :  { %257 = vmatmul.f32.gmra.mxu2 %v127_v12 }
  0x32   :  { %322 = vmatmul.f32.gmra.mxu3 %v128_v16 }
  0x36   :  { %131 = vmatmul.f32.gmra.mxu0 %v130_v26 }
  0x37   :  { %198 = vmatmul.f32.gmra.mxu1 %v2983_v6 }
  0x39   :  { %262 = vmatmul.f32.gmra.mxu2 %v135_v22 }
  0x3a   :  { %328 = vmatmul.f32.gmra.mxu3 %v136_v27 }
  0x3e   :  { %139 = vmatmul.f32.gmra.mxu0 %v138_v33 }
  0x3f   :  { %202 = vmatmul.f32.gmra.mxu1 %v2998_v18 }
  0x41   :  { %267 = vmatmul.f32.gmra.mxu2 %v143_v31 }
  0x42   :  { %334 = vmatmul.f32.gmra.mxu3 %v144_v34 }
  0x46   :  { %147 = vmatmul.f32.gmra.mxu0 %v146_v37 }
  0x47   :  { %206 = vmatmul.f32.gmra.mxu1 %v3008_v29 }
  0x49   :  { %477 = vmatmul.f32.vlgmr.msrb.gmra.mxu2 %v2806_v38 }
  0x4a   :  { %518 = vmatmul.f32.vlgmr.msrb.gmra.mxu3 %v2806_v38  ;;  %594 = vmatpush.msrb.mxu2 %v2897_v24 }
  0x4b   :  { %625 = vmatpush.msrb.mxu3 %v2877_v10 }
  0x4c   :  { %598 = vmatpush.msrb.mxu2 %v2907_v32 }
  0x4d   :  { %627 = vmatpush.msrb.mxu3 %v2891_v19 }
  0x4e   :  { %361 = vmatmul.f32.vlgmr.msrb.gmra.mxu0 %v2875_v9  ;;  %602 = vmatpush.msrb.mxu2 %v2935_v46 }
  0x4f   :  { %629 = vmatpush.msrb.mxu3 %v2921_v40  ;;  %412 = vmatmul.f32.vlgmr.msrb.gmra.mxu1 %v2875_v9 }
  0x50   :  { %1220 = vmatpush.msrb.mxu0 %v2888_v17  ;;  %606 = vmatpush.msrb.mxu2 %v2976_v2 }
  0x51   :  { %631 = vmatpush.msrb.mxu3 %v2962_v60  ;;  %548 = vmatmul.f32.vlgmr.msra.gmra.mxu2 %v2806_v38 }
  0x52   :  { %575 = vmatmul.f32.vlgmr.msra.gmra.mxu3 %v2806_v38  ;;  %693 = vmatpush.msra.mxu2 %v2877_v10 }
  0x53   :  { %726 = vmatpush.msra.mxu3 %v2913_v36  ;;  %1223 = vmatpush.msrb.mxu0 %v2900_v25 }
  0x54   :  { %1249 = vmatpush.msrb.mxu1 %v2877_v10  ;;  %695 = vmatpush.msra.mxu2 %v2891_v19 }
  0x55   :  { %732 = vmatpush.msra.mxu3 %v2925_v43  ;;  %1226 = vmatpush.msrb.mxu0 %v2930_v45 }
  0x56   :  { %365 = vmatmul.f32.gmra.mxu0 %v2884_v15  ;;  %1251 = vmatpush.msrb.mxu1 %v2891_v19 }
  0x57   :  { %738 = vmatpush.msra.mxu3 %v2948_v52  ;;  %697 = vmatpush.msra.mxu2 %v2921_v40 }
  0x58   :  { %416 = vmatmul.f32.gmra.mxu1 %v2884_v15  ;;  %1229 = vmatpush.msrb.mxu0 %v2969_v62 }
  0x59   :  { %744 = vmatpush.msra.mxu3 %v2985_v7  ;;  %699 = vmatpush.msra.mxu2 %v2962_v60 }
  0x5a   :  { %608 = vmatmul.f32.vlgmr.msrb.gmra.mxu2 %v2806_v38  ;;  %633 = vmatmul.f32.vlgmr.msrb.gmra.mxu3 %v2806_v38 }
  0x5b   :  { %793 = vmatpush.msrb.mxu3 %v2877_v10  ;;  %764 = vmatpush.msrb.mxu2 %v2888_v17 }
  0x5c   :  { %1253 = vmatpush.msrb.mxu1 %v2921_v40 }
  0x5d   :  { %795 = vmatpush.msrb.mxu3 %v2891_v19  ;;  %767 = vmatpush.msrb.mxu2 %v2900_v25 }
  0x5e   :  { %369 = vmatmul.f32.gmra.mxu0 %v2902_v28  ;;  %1255 = vmatpush.msrb.mxu1 %v2962_v60 }
  0x5f   :  { %797 = vmatpush.msrb.mxu3 %v2921_v40  ;;  %770 = vmatpush.msrb.mxu2 %v2930_v45 }
  0x60   :  { %420 = vmatmul.f32.gmra.mxu1 %v2902_v28 }
  0x61   :  { %799 = vmatpush.msrb.mxu3 %v2962_v60  ;;  %773 = vmatpush.msrb.mxu2 %v2969_v62 }
  0x66   :  { %373 = vmatmul.f32.gmra.mxu0 %v2938_v49 }
  0x68   :  { %424 = vmatmul.f32.gmra.mxu1 %v2938_v49 }
  0x6e   :  { %377 = vmatmul.f32.gmra.mxu0 %v2957_v58 }
  0x70   :  { %428 = vmatmul.f32.gmra.mxu1 %v2957_v58 }
  0x76   :  { %381 = vmatmul.f32.gmra.mxu0 %v2983_v6 }
  0x78   :  { %432 = vmatmul.f32.gmra.mxu1 %v2983_v6 }
  0x7e   :  { %385 = vmatmul.f32.gmra.mxu0 %v2998_v18 }
  0x80   :  { %436 = vmatmul.f32.gmra.mxu1 %v2998_v18 }
  0x86   :  { %389 = vmatmul.f32.gmra.mxu0 %v3008_v29 }
  0x88   :  { %440 = vmatmul.f32.gmra.mxu1 %v3008_v29 }
  0x8b   :  { %v92_v9 = vpop.f32.mrf.mxu0 }
  0x8c   :  { %v179_v15 = vpop.f32.mrf.mxu1  ;;  %v233_v28 = vpop.f32.mrf.mxu2 }
  0x8d   :  { %v3062_v39 = vpop.f32.mrf.mxu3 }
  0x93   :  { %v3064_v41 = vpop.f32.mrf.mxu0 }
  0x94   :  { %v3066_v42 = vpop.f32.mrf.mxu1  ;;  %v3068_v44 = vpop.f32.mrf.mxu2 }
  0x95   :  { %v3070_v47 = vpop.f32.mrf.mxu3 }
  0x9b   :  { %v3072_v48 = vpop.f32.mrf.mxu0 }
  0x9c   :  { %v3074_v49 = vpop.f32.mrf.mxu1  ;;  %v3076_v50 = vpop.f32.mrf.mxu2 }
  0x9d   :  { %v3078_v51 = vpop.f32.mrf.mxu3 }
  0xa3   :  { %v116_v54 = vpop.f32.mrf.mxu0 }
  0xa4   :  { %v117_v55 = vadd.f32 %v3083_v53, %v116_v54  ;;  %v191_v56 = vpop.f32.mrf.mxu1  ;;  %v248_v57 = vpop.f32.mrf.mxu2 }
  0xa5   :  { %v311_v59 = vpop.f32.mrf.mxu3 }
  0xa6   :  { %v192_v58 = vadd.f32 %v191_v56, %v117_v55 }
  0xa8   :  { %v249_v61 = vadd.f32 %v248_v57, %v192_v58 }
  0xaa   :  { %v312_v63 = vadd.f32 %v311_v59, %v249_v61 }
  0xab   :  { %v124_v0 = vpop.f32.mrf.mxu0 }
  0xac   :  { %v125_v1 = vadd.f32 %v3083_v53, %v124_v0  ;;  %v195_v3 = vpop.f32.mrf.mxu1  ;;  %v253_v4 = vpop.f32.mrf.mxu2 }
  0xad   :  { %v317_v6 = vpop.f32.mrf.mxu3 }
  0xae   :  { %v196_v5 = vadd.f32 %v195_v3, %v125_v1  ;;  %v93_v1 = vadd.f32 %v3083_v53, %v92_v9 }
  0xb0   :  { %v254_v8 = vadd.f32 %v253_v4, %v196_v5  ;;  %v180_v4 = vadd.f32 %v179_v15, %v93_v1 }
  0xb2   :  { %v318_v11 = vadd.f32 %v317_v6, %v254_v8 }
  0xb3   :  { %v132_v12 = vpop.f32.mrf.mxu0 }
  0xb4   :  { %v133_v13 = vadd.f32 %v3083_v53, %v132_v12  ;;  %v199_v14 = vpop.f32.mrf.mxu1  ;;  %v258_v16 = vpop.f32.mrf.mxu2  ;;  %v234_v12 = vadd.f32 %v233_v28, %v180_v4 }
  0xb5   :  { %v323_v20 = vpop.f32.mrf.mxu3 }
  0xb6   :  { %v200_v18 = vadd.f32 %v199_v14, %v133_v13 }
  0xb8   :  { %v259_v21 = vadd.f32 %v258_v16, %v200_v18  ;;  %v294_v18 = vadd.f32 %v3062_v39, %v234_v12 }
  0xba   :  { %v324_v22 = vadd.f32 %v323_v20, %v259_v21 }
  0xbb   :  { %v140_v23 = vpop.f32.mrf.mxu0 }
  0xbc   :  { %v141_v26 = vadd.f32 %v3083_v53, %v140_v23  ;;  %v203_v27 = vpop.f32.mrf.mxu1  ;;  %v263_v29 = vpop.f32.mrf.mxu2 }
  0xbd   :  { %v329_v31 = vpop.f32.mrf.mxu3 }
  0xbe   :  { %v204_v30 = vadd.f32 %v203_v27, %v141_v26 }
  0xc0   :  { %v264_v33 = vadd.f32 %v263_v29, %v204_v30 }
  0xc2   :  { %v330_v34 = vadd.f32 %v329_v31, %v264_v33 }
  0xc3   :  { %v148_v35 = vpop.f32.mrf.mxu0 }
  0xc4   :  { %v149_v37 = vadd.f32 %v3083_v53, %v148_v35  ;;  %v207_v38 = vpop.f32.mrf.mxu1  ;;  %v268_v54 = vpop.f32.mrf.mxu2 }
  0xc5   :  { %v335_v56 = vpop.f32.mrf.mxu3 }
  0xc6   :  { %v208_v55 = vadd.f32 %v207_v38, %v149_v37 }
  0xc8   :  { %v269_v57 = vadd.f32 %v268_v54, %v208_v55 }
  0xca   :  { %v3090_v58 = vadd.f32 %v335_v56, %v269_v57 }
  0xcb   :  { %v362_v59 = vpop.f32.mrf.mxu0 }
  0xcc   :  { %v413_v61 = vpop.f32.mrf.mxu1  ;;  %v478_v0 = vpop.f32.mrf.mxu2  ;;  %v363_v21 = vadd.f32 %v362_v59, %v294_v18 }
  0xcd   :  { %v519_v3 = vpop.f32.mrf.mxu3 }
  0xce   :  { %v520_v13 = vadd.f32 %v519_v3, %v478_v0  ;;  %v414_v29 = vadd.f32 %v413_v61, %v363_v21 }
  0xd3   :  { %v3093_v5 = vpop.f32.mrf.mxu0 }
  0xd4   :  { %v549_v8 = vpop.f32.mrf.mxu2 }
  0xd5   :  { %v3095_v6 = vpop.f32.mrf.mxu1  ;;  %v576_v14 = vpop.f32.mrf.mxu3  ;;  %v550_v16 = vadd.f32 %v549_v8, %v520_v13 }
  0xd7   :  { %v577_v23 = vadd.f32 %v576_v14, %v550_v16 }
  0xdb   :  { %v3098_v20 = vpop.f32.mrf.mxu0 }
  0xdd   :  { %v3100_v26 = vpop.f32.mrf.mxu1  ;;  %v609_v9 = vpop.f32.mrf.mxu2 }
  0xde   :  { %v610_v27 = vadd.f32 %v609_v9, %v577_v23  ;;  %v634_v15 = vpop.f32.mrf.mxu3 }
  0xe0   :  { %v635_v30 = vadd.f32 %v634_v15, %v610_v27 }
  0xe2   :  { %v637_v31 = vadd.f32 %v635_v30, %v414_v29 }
  0xe3   :  { %v374_v33 = vpop.f32.mrf.mxu0 }
  0xe4   :  { %2742 = vtanh.f32 %v637_v31  ;;  %v375_v28 = vadd.f32 %v374_v33, %v312_v63  ;;  %v2728_v8 = vmul.f32 -1.442695, %v637_v31 }
  0xe5   :  { %v425_v35 = vpop.f32.mrf.mxu1 }
  0xe6   :  { %v3102_v37 = vadd.f32 %v425_v35, %v375_v28  ;;  %2744 = vpow2.f32 %v2728_v8  ;;  %v101_v8 = vadd.f32 %v3083_v53, %v3064_v41 }
  0xea   :  { %v2743_v38 = vpop.eup %2742 }
  0xeb   :  { %v378_v39 = vpop.f32.mrf.mxu0  ;;  %660 = vrot.lane.b32.xlu0 %v2743_v38, %s2807_s3 }
  0xec   :  { %v379_v54 = vadd.f32 %v378_v39, %v318_v11  ;;  %v2745_v12 = vpop.eup %2744 }
  0xed   :  { %v429_v55 = vpop.f32.mrf.mxu1  ;;  %v641_v13 = vadd.f32 1.0, %v2745_v12  ;;  %v184_v12 = vadd.f32 %v3066_v42, %v101_v8 }
  0xee   :  { %v3105_v56 = vadd.f32 %v429_v55, %v379_v54 }
  0xef   :  { %2746 = vrcp.f32 %v641_v13  ;;  %vm647_vm2 = vweird.f32 %v641_v13  ;;  %v651_v23 = vand.u32 2147483647, %v641_v13 }
  0xf1   :  { %vm652_vm4 = vcmp.eq.f32.partialorder %v651_v23, 8.507059e+37 }
  0xf3   :  { %v382_v57 = vpop.f32.mrf.mxu0 }
  0xf4   :  { %v383_v59 = vadd.f32 %v382_v57, %v324_v22  ;;  %v653_v22 = vand.u32 2147483648, %v641_v13 }
  0xf5   :  { %v433_v61 = vpop.f32.mrf.mxu1  ;;  %v2747_v14 = vpop.eup %2746 }
  0xf6   :  { %v3107_v0 = vadd.f32 %v433_v61, %v383_v59  ;;  %v643_v11 = vmul.f32 %v2747_v14, %v641_v13  ;;  %vm648_vm1 = vweird.f32 %v2747_v14 }
  0xf7   :  { %vm649_vm3 = vmor %vm647_vm2, %vm648_vm1 }
  0xf8   :  { %v644_v16 = vsub.f32 1.0, %v643_v11  ;;  %v239_v11 = vadd.f32 %v3068_v44, %v184_v12 }
  0xfa   :  { %v645_v18 = vmul.f32 %v2747_v14, %v644_v16 }
  0xfb   :  { %v386_v1 = vpop.f32.mrf.mxu0 }
  0xfc   :  { %v387_v3 = vadd.f32 %v386_v1, %v330_v34  ;;  %v646_v21 = vadd.f32 %v2747_v14, %v645_v18  ;;  %v654_v34 = vor.u32 1.1754944e-38, %v653_v22 }
  0xfd   :  { %v437_v63 = vpop.f32.mrf.mxu1 }
  0xfe   :  { %v3109_v4 = vadd.f32 %v437_v63, %v387_v3  ;;  %v650_v9 = vsel %vm649_vm3, %v2747_v14, %v646_v21  ;;  %v300_v21 = vadd.f32 %v3070_v47, %v239_v11 }
  0xff   :  { %v655_v15 = vsel %vm652_vm4, %v654_v34, %v650_v9 }
 0x100   :  { %v658_v30 = vmul.f32 0.0, %v655_v15  ;;  %v367_v22 = vadd.f32 %v3093_v5, %v300_v21 }
 0x15d   :  { %v661_v27 = vpop.permute.xlu0 %660 }
 0x15e   :  { %v663_v29 = vmul.f32 %v661_v27, %v655_v15 }
 0x160   :  { %665 = vrot.lane.b32.xlu0 %v663_v29, %s2808_s10 }
 0x1d2   :  { %v666_v31 = vpop.permute.xlu0 %665 }
 0x1d3   :  { %v3112_v33 = vadd.f32 %v666_v31, %v658_v30 }
 0x1d5   :  { %2748 = vtanh.f32 %v3112_v33 }
 0x1db   :  { %v2749_v28 = vpop.eup %2748 }
 0x1dc   :  { %671 = vrot.lane.b32.xlu1 %v2749_v28, %s2807_s3 }
 0x24e   :  { %v672_v35 = vpop.permute.xlu1 %671 }
 0x24f   :  { %v674_v38 = vmul.f32 %v672_v35, %v655_v15  ;;  %v418_v15 = vadd.f32 %v3095_v6, %v367_v22 }
 0x251   :  { %676 = vrot.lane.b32.xlu1 %v674_v38, %s2808_s10 }
 0x2c3   :  { %v677_v39 = vpop.permute.xlu1 %676 }
 0x2c4   :  { %v678_v54 = vsel %vm448_vm5, %v677_v39, 0 }
 0x2c5   :  { %v700_v55 = vand.u32 4294901760, %v678_v54 }
 0x2c7   :  { %v701_v57 = vsub.f32 %v678_v54, %v700_v55  ;;  %746 = vmatmul.f32.vlgmr.msra.gmra.mxu3 %v700_v55 }
 0x2c8   :  { %853 = vmatpush.msra.mxu3 %v2877_v10 }
 0x2c9   :  { %v702_v59 = vand.u32 4294901760, %v701_v57 }
 0x2ca   :  { %855 = vmatpush.msra.mxu3 %v2891_v19 }
 0x2cb   :  { %v703_v61 = vsub.f32 %v701_v57, %v702_v59 }
 0x2cc   :  { %857 = vmatpush.msra.mxu3 %v2921_v40 }
 0x2cd   :  { %v704_v1 = vand.u32 4294901760, %v703_v61 }
 0x2ce   :  { %859 = vmatpush.msra.mxu3 %v2962_v60 }
 0x2cf   :  { %705 = vmatmul.f32.vlgmr.msra.gmra.mxu2 %v704_v1  ;;  %803 = vmatmul.f32.vlgmr.msrb.gmra.mxu3 %v702_v59 }
 0x2d0   :  { %822 = vmatpush.msra.mxu2 %v2897_v24  ;;  %954 = vmatpush.msrb.mxu3 %v2913_v36 }
 0x2d2   :  { %826 = vmatpush.msra.mxu2 %v2907_v32  ;;  %960 = vmatpush.msrb.mxu3 %v2925_v43 }
 0x2d4   :  { %830 = vmatpush.msra.mxu2 %v2935_v46  ;;  %966 = vmatpush.msrb.mxu3 %v2948_v52 }
 0x2d6   :  { %834 = vmatpush.msra.mxu2 %v2976_v2  ;;  %972 = vmatpush.msrb.mxu3 %v2985_v7 }
 0x2d7   :  { %776 = vmatmul.f32.vlgmr.msrb.gmra.mxu2 %v701_v57  ;;  %861 = vmatmul.f32.vlgmr.msra.gmra.mxu3 %v700_v55 }
 0x2d8   :  { %921 = vmatpush.msrb.mxu2 %v2877_v10  ;;  %1021 = vmatpush.msra.mxu3 %v2877_v10 }
 0x2da   :  { %923 = vmatpush.msrb.mxu2 %v2891_v19  ;;  %1023 = vmatpush.msra.mxu3 %v2891_v19 }
 0x2dc   :  { %925 = vmatpush.msrb.mxu2 %v2921_v40  ;;  %1025 = vmatpush.msra.mxu3 %v2921_v40 }
 0x2de   :  { %927 = vmatpush.msrb.mxu2 %v2962_v60  ;;  %1027 = vmatpush.msra.mxu3 %v2962_v60 }
 0x2df   :  { %836 = vmatmul.f32.vlgmr.msra.gmra.mxu2 %v700_v55 }
 0x2e0   :  { %992 = vmatpush.msra.mxu2 %v2888_v17 }
 0x2e2   :  { %995 = vmatpush.msra.mxu2 %v2900_v25 }
 0x2e4   :  { %998 = vmatpush.msra.mxu2 %v2930_v45 }
 0x2e6   :  { %1001 = vmatpush.msra.mxu2 %v2969_v62 }
 0x34a   :  { %v747_v3 = vpop.f32.mrf.mxu3 }
 0x352   :  { %v706_v63 = vpop.f32.mrf.mxu2  ;;  %v804_v13 = vpop.f32.mrf.mxu3 }
 0x353   :  { %v748_v16 = vadd.f32 %v747_v3, %v706_v63 }
 0x35a   :  { %v777_v14 = vpop.f32.mrf.mxu2  ;;  %v862_v27 = vpop.f32.mrf.mxu3 }
 0x35b   :  { %v778_v18 = vadd.f32 %v777_v14, %v748_v16 }
 0x35d   :  { %v805_v23 = vadd.f32 %v804_v13, %v778_v18 }
 0x362   :  { %v837_v9 = vpop.f32.mrf.mxu2 }
 0x363   :  { %v838_v34 = vadd.f32 %v837_v9, %v805_v23  ;;  %v109_v23 = vadd.f32 %v3083_v53, %v3072_v48 }
 0x365   :  { %v863_v29 = vadd.f32 %v862_v27, %v838_v34  ;;  %v188_v27 = vadd.f32 %v3074_v49, %v109_v23 }
 0x367   :  { %v865_v41 = vadd.f32 %v863_v29, %v418_v15  ;;  %v3185_v15 = vpop.f32.mrf.mxu0  ;;  %v244_v29 = vadd.f32 %v3076_v50, %v188_v27 }
 0x369   :  { %2750 = vtanh.f32 %v865_v41  ;;  %v2729_v30 = vmul.f32 -1.442695, %v865_v41  ;;  %v3188_v41 = vpop.f32.mrf.mxu1 }
 0x36b   :  { %2752 = vpow2.f32 %v2729_v30 }
 0x36f   :  { %v2751_v42 = vpop.eup %2750 }
 0x370   :  { %888 = vrot.lane.b32.xlu2 %v2751_v42, %s2807_s3 }
 0x371   :  { %v2753_v44 = vpop.eup %2752 }
 0x372   :  { %v869_v31 = vadd.f32 1.0, %v2753_v44  ;;  %v306_v44 = vadd.f32 %v3078_v51, %v244_v29 }
 0x374   :  { %2754 = vrcp.f32 %v869_v31  ;;  %v881_v39 = vand.u32 2147483648, %v869_v31  ;;  %vm875_vm7 = vweird.f32 %v869_v31  ;;  %v879_v6 = vand.u32 2147483647, %v869_v31 }
 0x376   :  { %v882_v55 = vor.u32 1.1754944e-38, %v881_v39  ;;  %vm880_vm9 = vcmp.eq.f32.partialorder %v879_v6, 8.507059e+37 }
 0x37a   :  { %v2755_v47 = vpop.eup %2754 }
 0x37b   :  { %v871_v28 = vmul.f32 %v2755_v47, %v869_v31  ;;  %vm876_vm6 = vweird.f32 %v2755_v47 }
 0x37c   :  { %vm877_vm8 = vmor %vm875_vm7, %vm876_vm6 }
 0x37d   :  { %v872_v5 = vsub.f32 1.0, %v871_v28  ;;  %v371_v28 = vadd.f32 %v3098_v20, %v306_v44 }
 0x37f   :  { %v873_v35 = vmul.f32 %v2755_v47, %v872_v5  ;;  %v422_v49 = vadd.f32 %v3100_v26, %v371_v28 }
 0x381   :  { %v874_v38 = vadd.f32 %v2755_v47, %v873_v35 }
 0x383   :  { %v878_v54 = vsel %vm877_vm8, %v2755_v47, %v874_v38 }
 0x384   :  { %v883_v59 = vsel %vm880_vm9, %v882_v55, %v878_v54 }
 0x385   :  { %v886_v1 = vmul.f32 %v883_v59, %v3112_v33 }
 0x3ca   :  { %v889_v57 = vpop.permute.xlu2 %888 }
 0x3cb   :  { %v891_v61 = vmul.f32 %v889_v57, %v883_v59 }
 0x3cd   :  { %893 = vrot.lane.b32.xlu2 %v891_v61, %s2808_s10 }
 0x427   :  { %v894_v3 = vpop.permute.xlu2 %893 }
 0x428   :  { %v3152_v63 = vadd.f32 %v894_v3, %v886_v1 }
 0x42a   :  { %2756 = vtanh.f32 %v3152_v63 }
 0x430   :  { %v2757_v8 = vpop.eup %2756 }
 0x431   :  { %899 = vrot.lane.b32.xlu0 %v2757_v8, %s2807_s3 }
 0x4a3   :  { %v900_v12 = vpop.permute.xlu0 %899 }
 0x4a4   :  { %v902_v13 = vmul.f32 %v900_v12, %v883_v59 }
 0x4a6   :  { %904 = vrot.lane.b32.xlu1 %v902_v13, %s2808_s10 }
 0x518   :  { %v905_v14 = vpop.permute.xlu1 %904 }
 0x519   :  { %v906_v11 = vsel %vm448_vm5, %v905_v14, 0 }
 0x51a   :  { %v928_v16 = vand.u32 4294901760, %v906_v11 }
 0x51c   :  { %v929_v18 = vsub.f32 %v906_v11, %v928_v16  ;;  %974 = vmatmul.f32.vlgmr.msrb.gmra.mxu3 %v928_v16  ;;  %1064 = vmatmul.f32.vlgmr.msra.gmra.mxu0 %v928_v16 }
 0x51d   :  { %1089 = vmatmul.f32.vlgmr.msra.gmra.mxu1 %v928_v16  ;;  %1182 = vmatpush.msrb.mxu3 %v2913_v36 }
 0x51e   :  { %v930_v33 = vand.u32 4294901760, %v929_v18  ;;  %1410 = vmatpush.msra.mxu1 %v2913_v36  ;;  %1377 = vmatpush.msra.mxu0 %v2877_v10 }
 0x51f   :  { %1188 = vmatpush.msrb.mxu3 %v2925_v43 }
 0x520   :  { %v931_v21 = vsub.f32 %v929_v18, %v930_v33  ;;  %1416 = vmatpush.msra.mxu1 %v2925_v43  ;;  %1379 = vmatpush.msra.mxu0 %v2891_v19 }
 0x521   :  { %1194 = vmatpush.msrb.mxu3 %v2948_v52 }
 0x522   :  { %v932_v22 = vand.u32 4294901760, %v931_v21  ;;  %1422 = vmatpush.msra.mxu1 %v2948_v52  ;;  %1381 = vmatpush.msra.mxu0 %v2921_v40 }
 0x523   :  { %1200 = vmatpush.msrb.mxu3 %v2985_v7 }
 0x524   :  { %933 = vmatmul.f32.vlgmr.msrb.gmra.mxu2 %v932_v22  ;;  %1031 = vmatmul.f32.vlgmr.msra.gmra.mxu3 %v930_v33 }
 0x525   :  { %1149 = vmatpush.msrb.mxu2 %v2877_v10  ;;  %1309 = vmatpush.msra.mxu3 %v2877_v10 }
 0x526   :  { %1428 = vmatpush.msra.mxu1 %v2985_v7  ;;  %1383 = vmatpush.msra.mxu0 %v2962_v60 }
 0x527   :  { %1151 = vmatpush.msrb.mxu2 %v2891_v19  ;;  %1311 = vmatpush.msra.mxu3 %v2891_v19 }
 0x529   :  { %1153 = vmatpush.msrb.mxu2 %v2921_v40  ;;  %1313 = vmatpush.msra.mxu3 %v2921_v40 }
 0x52b   :  { %1155 = vmatpush.msrb.mxu2 %v2962_v60  ;;  %1315 = vmatpush.msra.mxu3 %v2962_v60 }
 0x52c   :  { %1004 = vmatmul.f32.vlgmr.msra.gmra.mxu2 %v929_v18 }
 0x52d   :  { %1278 = vmatpush.msra.mxu2 %v2897_v24 }
 0x52f   :  { %1282 = vmatpush.msra.mxu2 %v2907_v32 }
 0x531   :  { %1286 = vmatpush.msra.mxu2 %v2935_v46 }
 0x533   :  { %1290 = vmatpush.msra.mxu2 %v2976_v2 }
 0x599   :  { %v1065_v48 = vpop.f32.mrf.mxu0 }
 0x59a   :  { %v1090_v35 = vpop.f32.mrf.mxu1 }
 0x59f   :  { %v975_v9 = vpop.f32.mrf.mxu3 }
 0x5a7   :  { %v934_v34 = vpop.f32.mrf.mxu2  ;;  %v1032_v47 = vpop.f32.mrf.mxu3 }
 0x5a8   :  { %v976_v42 = vadd.f32 %v975_v9, %v934_v34 }
 0x5af   :  { %v1005_v30 = vpop.f32.mrf.mxu2 }
 0x5b0   :  { %v1006_v31 = vadd.f32 %v1005_v30, %v976_v42 }
 0x5b2   :  { %v1033_v5 = vadd.f32 %v1032_v47, %v1006_v31 }
 0x5b4   :  { %v1066_v53 = vadd.f32 %v1065_v48, %v1033_v5 }
 0x5b6   :  { %v1091_v38 = vadd.f32 %v1090_v35, %v1066_v53 }
 0x5b8   :  { %v1093_v39 = vadd.f32 %v1091_v38, %v422_v49 }
 0x5ba   :  { %2758 = vtanh.f32 %v1093_v39  ;;  %v2730_v6 = vmul.f32 -1.442695, %v1093_v39 }
 0x5bc   :  { %2760 = vpow2.f32 %v2730_v6 }
 0x5c0   :  { %v2759_v50 = vpop.eup %2758 }
 0x5c1   :  { %1116 = vrot.lane.b32.xlu2 %v2759_v50, %s2807_s3 }
 0x5c2   :  { %v2761_v54 = vpop.eup %2760 }
 0x5c3   :  { %v1097_v51 = vadd.f32 1.0, %v2761_v54 }
 0x5c5   :  { %2762 = vrcp.f32 %v1097_v51  ;;  %v1109_v1 = vand.u32 2147483648, %v1097_v51  ;;  %vm1103_vm11 = vweird.f32 %v1097_v51  ;;  %v1107_v26 = vand.u32 2147483647, %v1097_v51 }
 0x5c7   :  { %v1110_v8 = vor.u32 1.1754944e-38, %v1109_v1  ;;  %vm1108_vm13 = vcmp.eq.f32.partialorder %v1107_v26, 8.507059e+37 }
 0x5cb   :  { %v2763_v55 = vpop.eup %2762 }
 0x5cc   :  { %v1099_v57 = vmul.f32 %v2763_v55, %v1097_v51  ;;  %vm1104_vm10 = vweird.f32 %v2763_v55 }
 0x5cd   :  { %vm1105_vm12 = vmor %vm1103_vm11, %vm1104_vm10 }
 0x5ce   :  { %v1100_v20 = vsub.f32 1.0, %v1099_v57 }
 0x5d0   :  { %v1101_v59 = vmul.f32 %v2763_v55, %v1100_v20 }
 0x5d2   :  { %v1102_v61 = vadd.f32 %v2763_v55, %v1101_v59 }
 0x5d4   :  { %v1106_v3 = vsel %vm1105_vm12, %v2763_v55, %v1102_v61 }
 0x5d5   :  { %v1111_v13 = vsel %vm1108_vm13, %v1110_v8, %v1106_v3 }
 0x5d6   :  { %v1114_v11 = vmul.f32 %v1111_v13, %v3152_v63 }
 0x61b   :  { %v1117_v12 = vpop.permute.xlu2 %1116 }
 0x61c   :  { %v1119_v14 = vmul.f32 %v1117_v12, %v1111_v13 }
 0x61e   :  { %1121 = vrot.lane.b32.xlu0 %v1119_v14, %s2808_s10 }
 0x690   :  { %v1122_v16 = vpop.permute.xlu0 %1121 }
 0x691   :  { %v3196_v18 = vadd.f32 %v1122_v16, %v1114_v11 }
 0x693   :  { %2764 = vtanh.f32 %v3196_v18 }
 0x699   :  { %v2765_v33 = vpop.eup %2764 }
 0x69a   :  { %1127 = vrot.lane.b32.xlu1 %v2765_v33, %s2807_s3 }
 0x70c   :  { %v1128_v21 = vpop.permute.xlu1 %1127 }
 0x70d   :  { %v1130_v22 = vmul.f32 %v1128_v21, %v1111_v13 }
 0x70f   :  { %1132 = vrot.lane.b32.xlu2 %v1130_v22, %s2808_s10 }
 0x769   :  { %v1133_v23 = vpop.permute.xlu2 %1132 }
 0x76a   :  { %v1134_v9 = vsel %vm448_vm5, %v1133_v23, 0 }
 0x76b   :  { %v1156_v34 = vand.u32 4294901760, %v1134_v9 }
 0x76d   :  { %v1157_v27 = vsub.f32 %v1134_v9, %v1156_v34  ;;  %1202 = vmatmul.f32.vlgmr.msrb.gmra.mxu3 %v1156_v34 }
 0x76e   :  { %1477 = vmatpush.msrb.mxu3 %v2877_v10 }
 0x76f   :  { %v1158_v63 = vand.u32 4294901760, %v1157_v27  ;;  %1232 = vmatmul.f32.vlgmr.msrb.gmra.mxu0 %v1157_v27 }
 0x770   :  { %1479 = vmatpush.msrb.mxu3 %v2891_v19  ;;  %1506 = vmatpush.msrb.mxu0 %v2897_v24 }
 0x771   :  { %v1159_v29 = vsub.f32 %v1157_v27, %v1158_v63  ;;  %1259 = vmatmul.f32.vlgmr.msrb.gmra.mxu1 %v1158_v63 }
 0x772   :  { %1481 = vmatpush.msrb.mxu3 %v2921_v40  ;;  %1537 = vmatpush.msrb.mxu1 %v2877_v10 }
 0x773   :  { %v1160_v42 = vand.u32 4294901760, %v1159_v29  ;;  %1510 = vmatpush.msrb.mxu0 %v2907_v32 }
 0x774   :  { %1483 = vmatpush.msrb.mxu3 %v2962_v60  ;;  %1539 = vmatpush.msrb.mxu1 %v2891_v19 }
 0x775   :  { %1161 = vmatmul.f32.vlgmr.msrb.gmra.mxu2 %v1160_v42  ;;  %1317 = vmatmul.f32.vlgmr.msra.gmra.mxu3 %v1156_v34 }
 0x776   :  { %1448 = vmatpush.msrb.mxu2 %v2888_v17  ;;  %1541 = vmatpush.msrb.mxu1 %v2921_v40 }
 0x777   :  { %1514 = vmatpush.msrb.mxu0 %v2935_v46  ;;  %1638 = vmatpush.msra.mxu3 %v2913_v36 }
 0x778   :  { %1451 = vmatpush.msrb.mxu2 %v2900_v25  ;;  %1543 = vmatpush.msrb.mxu1 %v2962_v60 }
 0x779   :  { %1518 = vmatpush.msrb.mxu0 %v2976_v2  ;;  %1644 = vmatpush.msra.mxu3 %v2925_v43 }
 0x77a   :  { %1454 = vmatpush.msrb.mxu2 %v2930_v45 }
 0x77b   :  { %1650 = vmatpush.msra.mxu3 %v2948_v52 }
 0x77c   :  { %1457 = vmatpush.msrb.mxu2 %v2969_v62 }
 0x77d   :  { %1292 = vmatmul.f32.vlgmr.msra.gmra.mxu2 %v1156_v34  ;;  %1656 = vmatpush.msra.mxu3 %v2985_v7 }
 0x77e   :  { %1605 = vmatpush.msra.mxu2 %v2877_v10 }
 0x780   :  { %1607 = vmatpush.msra.mxu2 %v2891_v19 }
 0x782   :  { %1609 = vmatpush.msra.mxu2 %v2921_v40 }
 0x784   :  { %1611 = vmatpush.msra.mxu2 %v2962_v60 }
 0x7ec   :  { %v1233_v47 = vpop.f32.mrf.mxu0 }
 0x7ee   :  { %v1260_v5 = vpop.f32.mrf.mxu1 }
 0x7f0   :  { %v1203_v30 = vpop.f32.mrf.mxu3 }
 0x7f8   :  { %v1162_v44 = vpop.f32.mrf.mxu2  ;;  %v1318_v49 = vpop.f32.mrf.mxu3 }
 0x7f9   :  { %v1204_v31 = vadd.f32 %v1203_v30, %v1162_v44 }
 0x7fb   :  { %v1234_v28 = vadd.f32 %v1233_v47, %v1204_v31 }
 0x7fd   :  { %v1261_v48 = vadd.f32 %v1260_v5, %v1234_v28 }
 0x800   :  { %v1293_v53 = vpop.f32.mrf.mxu2 }
 0x801   :  { %v1294_v35 = vadd.f32 %v1293_v53, %v1261_v48 }
 0x803   :  { %v1319_v38 = vadd.f32 %v1318_v49, %v1294_v35 }
 0x805   :  { %v1321_v39 = vadd.f32 %v1319_v38, %v3102_v37 }
 0x807   :  { %2766 = vtanh.f32 %v1321_v39  ;;  %v2731_v6 = vmul.f32 -1.442695, %v1321_v39 }
 0x809   :  { %2768 = vpow2.f32 %v2731_v6 }
 0x80d   :  { %v2767_v50 = vpop.eup %2766 }
 0x80e   :  { %1344 = vrot.lane.b32.xlu0 %v2767_v50, %s2807_s3 }
 0x80f   :  { %v2769_v54 = vpop.eup %2768 }
 0x810   :  { %v1325_v51 = vadd.f32 1.0, %v2769_v54 }
 0x812   :  { %2770 = vrcp.f32 %v1325_v51  ;;  %v1337_v1 = vand.u32 2147483648, %v1325_v51  ;;  %vm1331_vm15 = vweird.f32 %v1325_v51  ;;  %v1335_v26 = vand.u32 2147483647, %v1325_v51 }
 0x814   :  { %v1338_v3 = vor.u32 1.1754944e-38, %v1337_v1  ;;  %vm1336_vm1 = vcmp.eq.f32.partialorder %v1335_v26, 8.507059e+37 }
 0x818   :  { %v2771_v55 = vpop.eup %2770 }
 0x819   :  { %v1327_v57 = vmul.f32 %v2771_v55, %v1325_v51  ;;  %vm1332_vm14 = vweird.f32 %v2771_v55 }
 0x81a   :  { %vm1333_vm0 = vmor %vm1331_vm15, %vm1332_vm14 }
 0x81b   :  { %v1328_v20 = vsub.f32 1.0, %v1327_v57 }
 0x81d   :  { %v1329_v59 = vmul.f32 %v2771_v55, %v1328_v20 }
 0x81f   :  { %v1330_v61 = vadd.f32 %v2771_v55, %v1329_v59 }
 0x821   :  { %v1334_v37 = vsel %vm1333_vm0, %v2771_v55, %v1330_v61 }
 0x822   :  { %v1339_v12 = vsel %vm1336_vm1, %v1338_v3, %v1334_v37 }
 0x823   :  { %v1342_v14 = vmul.f32 %v1339_v12, %v3196_v18 }
 0x880   :  { %v1345_v8 = vpop.permute.xlu0 %1344 }
 0x881   :  { %v1347_v13 = vmul.f32 %v1345_v8, %v1339_v12 }
 0x883   :  { %1349 = vrot.lane.b32.xlu1 %v1347_v13, %s2808_s10 }
 0x8f5   :  { %v1350_v11 = vpop.permute.xlu1 %1349 }
 0x8f6   :  { %v3230_v16 = vadd.f32 %v1350_v11, %v1342_v14 }
 0x8f8   :  { %2772 = vtanh.f32 %v3230_v16 }
 0x8fe   :  { %v2773_v33 = vpop.eup %2772 }
 0x8ff   :  { %1355 = vrot.lane.b32.xlu2 %v2773_v33, %s2807_s3 }
 0x959   :  { %v1356_v21 = vpop.permute.xlu2 %1355 }
 0x95a   :  { %v1358_v22 = vmul.f32 %v1356_v21, %v1339_v12 }
 0x95c   :  { %1360 = vrot.lane.b32.xlu0 %v1358_v22, %s2808_s10 }
 0x9ce   :  { %v1361_v23 = vpop.permute.xlu0 %1360 }
 0x9cf   :  { %v1362_v9 = vsel %vm448_vm5, %v1361_v23, 0 }
 0x9d0   :  { %v1384_v34 = vand.u32 4294901760, %v1362_v9 }
 0x9d2   :  { %v1385_v27 = vsub.f32 %v1362_v9, %v1384_v34  ;;  %1430 = vmatmul.f32.vlgmr.msra.gmra.mxu1 %v1384_v34 }
 0x9d3   :  { %1705 = vmatpush.msra.mxu1 %v2877_v10 }
 0x9d4   :  { %v1386_v18 = vand.u32 4294901760, %v1385_v27  ;;  %1460 = vmatmul.f32.vlgmr.msrb.gmra.mxu2 %v1385_v27 }
 0x9d5   :  { %1707 = vmatpush.msra.mxu1 %v2891_v19  ;;  %1734 = vmatpush.msrb.mxu2 %v2897_v24 }
 0x9d6   :  { %v1387_v63 = vsub.f32 %v1385_v27, %v1386_v18  ;;  %1487 = vmatmul.f32.vlgmr.msrb.gmra.mxu3 %v1386_v18 }
 0x9d7   :  { %1709 = vmatpush.msra.mxu1 %v2921_v40  ;;  %1765 = vmatpush.msrb.mxu3 %v2877_v10 }
 0x9d8   :  { %v1388_v29 = vand.u32 4294901760, %v1387_v63  ;;  %1738 = vmatpush.msrb.mxu2 %v2907_v32 }
 0x9d9   :  { %1711 = vmatpush.msra.mxu1 %v2962_v60  ;;  %1767 = vmatpush.msrb.mxu3 %v2891_v19 }
 0x9da   :  { %1389 = vmatmul.f32.vlgmr.msra.gmra.mxu0 %v1388_v29  ;;  %1545 = vmatmul.f32.vlgmr.msrb.gmra.mxu1 %v1384_v34 }
 0x9db   :  { %1676 = vmatpush.msra.mxu0 %v2888_v17  ;;  %1769 = vmatpush.msrb.mxu3 %v2921_v40 }
 0x9dc   :  { %1742 = vmatpush.msrb.mxu2 %v2935_v46  ;;  %1866 = vmatpush.msrb.mxu1 %v2913_v36 }
 0x9dd   :  { %1679 = vmatpush.msra.mxu0 %v2900_v25  ;;  %1771 = vmatpush.msrb.mxu3 %v2962_v60 }
 0x9de   :  { %1746 = vmatpush.msrb.mxu2 %v2976_v2  ;;  %1872 = vmatpush.msrb.mxu1 %v2925_v43 }
 0x9df   :  { %1682 = vmatpush.msra.mxu0 %v2930_v45 }
 0x9e0   :  { %1878 = vmatpush.msrb.mxu1 %v2948_v52 }
 0x9e1   :  { %1685 = vmatpush.msra.mxu0 %v2969_v62 }
 0x9e2   :  { %1520 = vmatmul.f32.vlgmr.msrb.gmra.mxu0 %v1384_v34  ;;  %1884 = vmatpush.msrb.mxu1 %v2985_v7 }
 0x9e3   :  { %1833 = vmatpush.msrb.mxu0 %v2877_v10 }
 0x9e5   :  { %1835 = vmatpush.msrb.mxu0 %v2891_v19 }
 0x9e7   :  { %1837 = vmatpush.msrb.mxu0 %v2921_v40 }
 0x9e9   :  { %1839 = vmatpush.msrb.mxu0 %v2962_v60 }
 0xa4f   :  { %v1431_v42 = vpop.f32.mrf.mxu1 }
 0xa57   :  { %v1390_v30 = vpop.f32.mrf.mxu0  ;;  %v1461_v31 = vpop.f32.mrf.mxu2 }
 0xa58   :  { %v1432_v44 = vadd.f32 %v1431_v42, %v1390_v30  ;;  %v1546_v35 = vpop.f32.mrf.mxu1 }
 0xa59   :  { %v1488_v28 = vpop.f32.mrf.mxu3 }
 0xa5a   :  { %v1462_v47 = vadd.f32 %v1461_v31, %v1432_v44 }
 0xa5c   :  { %v1489_v5 = vadd.f32 %v1488_v28, %v1462_v47 }
 0xa5f   :  { %v1521_v48 = vpop.f32.mrf.mxu0 }
 0xa60   :  { %v1522_v53 = vadd.f32 %v1521_v48, %v1489_v5 }
 0xa62   :  { %v1547_v49 = vadd.f32 %v1546_v35, %v1522_v53 }
 0xa64   :  { %v1549_v38 = vadd.f32 %v1547_v49, %v3105_v56 }
 0xa66   :  { %2774 = vtanh.f32 %v1549_v38  ;;  %v2732_v50 = vmul.f32 -1.442695, %v1549_v38 }
 0xa68   :  { %2776 = vpow2.f32 %v2732_v50 }
 0xa6c   :  { %v2775_v39 = vpop.eup %2774 }
 0xa6d   :  { %1572 = vrot.lane.b32.xlu1 %v2775_v39, %s2807_s3 }
 0xa6e   :  { %v2777_v6 = vpop.eup %2776 }
 0xa6f   :  { %v1553_v54 = vadd.f32 1.0, %v2777_v6 }
 0xa71   :  { %2778 = vrcp.f32 %v1553_v54  ;;  %v1565_v61 = vand.u32 2147483648, %v1553_v54  ;;  %vm1559_vm3 = vweird.f32 %v1553_v54  ;;  %v1563_v1 = vand.u32 2147483647, %v1553_v54 }
 0xa73   :  { %v1566_v26 = vor.u32 1.1754944e-38, %v1565_v61  ;;  %vm1564_vm6 = vcmp.eq.f32.partialorder %v1563_v1, 8.507059e+37 }
 0xa77   :  { %v2779_v51 = vpop.eup %2778 }
 0xa78   :  { %v1555_v55 = vmul.f32 %v2779_v51, %v1553_v54  ;;  %vm1560_vm2 = vweird.f32 %v2779_v51 }
 0xa79   :  { %vm1561_vm4 = vmor %vm1559_vm3, %vm1560_vm2 }
 0xa7a   :  { %v1556_v57 = vsub.f32 1.0, %v1555_v55 }
 0xa7c   :  { %v1557_v20 = vmul.f32 %v2779_v51, %v1556_v57 }
 0xa7e   :  { %v1558_v59 = vadd.f32 %v2779_v51, %v1557_v20 }
 0xa80   :  { %v1562_v56 = vsel %vm1561_vm4, %v2779_v51, %v1558_v59 }
 0xa81   :  { %v1567_v3 = vsel %vm1564_vm6, %v1566_v26, %v1562_v56 }
 0xa82   :  { %v1570_v12 = vmul.f32 %v1567_v3, %v3230_v16 }
 0xadf   :  { %v1573_v37 = vpop.permute.xlu1 %1572 }
 0xae0   :  { %v1575_v8 = vmul.f32 %v1573_v37, %v1567_v3 }
 0xae2   :  { %1577 = vrot.lane.b32.xlu2 %v1575_v8, %s2808_s10 }
 0xb3c   :  { %v1578_v13 = vpop.permute.xlu2 %1577 }
 0xb3d   :  { %v3264_v14 = vadd.f32 %v1578_v13, %v1570_v12 }
 0xb3f   :  { %2780 = vtanh.f32 %v3264_v14 }
 0xb45   :  { %v2781_v11 = vpop.eup %2780 }
 0xb46   :  { %1583 = vrot.lane.b32.xlu0 %v2781_v11, %s2807_s3 }
 0xbb8   :  { %v1584_v33 = vpop.permute.xlu0 %1583 }
 0xbb9   :  { %v1586_v21 = vmul.f32 %v1584_v33, %v1567_v3 }
 0xbbb   :  { %1588 = vrot.lane.b32.xlu1 %v1586_v21, %s2808_s10 }
 0xc2d   :  { %v1589_v22 = vpop.permute.xlu1 %1588 }
 0xc2e   :  { %v1590_v23 = vsel %vm448_vm5, %v1589_v22, 0 }
 0xc2f   :  { %v1612_v9 = vand.u32 4294901760, %v1590_v23 }
 0xc31   :  { %v1613_v34 = vsub.f32 %v1590_v23, %v1612_v9  ;;  %1658 = vmatmul.f32.vlgmr.msra.gmra.mxu3 %v1612_v9 }
 0xc32   :  { %1933 = vmatpush.msra.mxu3 %v2877_v10 }
 0xc33   :  { %v1614_v16 = vand.u32 4294901760, %v1613_v34  ;;  %1688 = vmatmul.f32.vlgmr.msra.gmra.mxu0 %v1613_v34 }
 0xc34   :  { %1935 = vmatpush.msra.mxu3 %v2891_v19  ;;  %1962 = vmatpush.msra.mxu0 %v2897_v24 }
 0xc35   :  { %v1615_v27 = vsub.f32 %v1613_v34, %v1614_v16  ;;  %1715 = vmatmul.f32.vlgmr.msra.gmra.mxu1 %v1614_v16 }
 0xc36   :  { %1937 = vmatpush.msra.mxu3 %v2921_v40  ;;  %1993 = vmatpush.msra.mxu1 %v2877_v10 }
 0xc37   :  { %v1616_v18 = vand.u32 4294901760, %v1615_v27  ;;  %1966 = vmatpush.msra.mxu0 %v2907_v32 }
 0xc38   :  { %1939 = vmatpush.msra.mxu3 %v2962_v60  ;;  %1995 = vmatpush.msra.mxu1 %v2891_v19 }
 0xc39   :  { %1617 = vmatmul.f32.vlgmr.msra.gmra.mxu2 %v1616_v18  ;;  %1773 = vmatmul.f32.vlgmr.msrb.gmra.mxu3 %v1612_v9 }
 0xc3a   :  { %1904 = vmatpush.msra.mxu2 %v2888_v17  ;;  %1997 = vmatpush.msra.mxu1 %v2921_v40 }
 0xc3b   :  { %1970 = vmatpush.msra.mxu0 %v2935_v46  ;;  %2094 = vmatpush.msrb.mxu3 %v2913_v36 }
 0xc3c   :  { %1907 = vmatpush.msra.mxu2 %v2900_v25  ;;  %1999 = vmatpush.msra.mxu1 %v2962_v60 }
 0xc3d   :  { %1974 = vmatpush.msra.mxu0 %v2976_v2  ;;  %2100 = vmatpush.msrb.mxu3 %v2925_v43 }
 0xc3e   :  { %1910 = vmatpush.msra.mxu2 %v2930_v45 }
 0xc3f   :  { %2106 = vmatpush.msrb.mxu3 %v2948_v52 }
 0xc40   :  { %1913 = vmatpush.msra.mxu2 %v2969_v62 }
 0xc41   :  { %1748 = vmatmul.f32.vlgmr.msrb.gmra.mxu2 %v1612_v9  ;;  %2112 = vmatpush.msrb.mxu3 %v2985_v7 }
 0xc42   :  { %2061 = vmatpush.msrb.mxu2 %v2877_v10 }
 0xc44   :  { %2063 = vmatpush.msrb.mxu2 %v2891_v19 }
 0xc46   :  { %2065 = vmatpush.msrb.mxu2 %v2921_v40 }
 0xc48   :  { %2067 = vmatpush.msrb.mxu2 %v2962_v60 }
 0xcb0   :  { %v1689_v29 = vpop.f32.mrf.mxu0 }
 0xcb2   :  { %v1716_v30 = vpop.f32.mrf.mxu1 }
 0xcb4   :  { %v1659_v36 = vpop.f32.mrf.mxu3 }
 0xcbc   :  { %v1618_v63 = vpop.f32.mrf.mxu2  ;;  %v1774_v47 = vpop.f32.mrf.mxu3 }
 0xcbd   :  { %v1660_v43 = vadd.f32 %v1659_v36, %v1618_v63 }
 0xcbf   :  { %v1690_v42 = vadd.f32 %v1689_v29, %v1660_v43 }
 0xcc1   :  { %v1717_v52 = vadd.f32 %v1716_v30, %v1690_v42 }
 0xcc4   :  { %v1749_v44 = vpop.f32.mrf.mxu2 }
 0xcc5   :  { %v1750_v31 = vadd.f32 %v1749_v44, %v1717_v52 }
 0xcc7   :  { %v1775_v28 = vadd.f32 %v1774_v47, %v1750_v31 }
 0xcc9   :  { %v1777_v7 = vadd.f32 %v1775_v28, %v3107_v0 }
 0xccb   :  { %2782 = vtanh.f32 %v1777_v7  ;;  %v2733_v48 = vmul.f32 -1.442695, %v1777_v7 }
 0xccd   :  { %2784 = vpow2.f32 %v2733_v48 }
 0xcd1   :  { %v2783_v5 = vpop.eup %2782 }
 0xcd2   :  { %1800 = vrot.lane.b32.xlu2 %v2783_v5, %s2807_s3 }
 0xcd3   :  { %v2785_v53 = vpop.eup %2784 }
 0xcd4   :  { %v1781_v35 = vadd.f32 1.0, %v2785_v53 }
 0xcd6   :  { %2786 = vrcp.f32 %v1781_v35  ;;  %v1793_v54 = vand.u32 2147483648, %v1781_v35  ;;  %vm1787_vm8 = vweird.f32 %v1781_v35  ;;  %v1791_v51 = vand.u32 2147483647, %v1781_v35 }
 0xcd8   :  { %v1794_v55 = vor.u32 1.1754944e-38, %v1793_v54  ;;  %vm1792_vm10 = vcmp.eq.f32.partialorder %v1791_v51, 8.507059e+37 }
 0xcdc   :  { %v2787_v49 = vpop.eup %2786 }
 0xcdd   :  { %v1783_v38 = vmul.f32 %v2787_v49, %v1781_v35  ;;  %vm1788_vm7 = vweird.f32 %v2787_v49 }
 0xcde   :  { %vm1789_vm9 = vmor %vm1787_vm8, %vm1788_vm7 }
 0xcdf   :  { %v1784_v39 = vsub.f32 1.0, %v1783_v38 }
 0xce1   :  { %v1785_v50 = vmul.f32 %v2787_v49, %v1784_v39 }
 0xce3   :  { %v1786_v6 = vadd.f32 %v2787_v49, %v1785_v50 }
 0xce5   :  { %v1790_v0 = vsel %vm1789_vm9, %v2787_v49, %v1786_v6 }
 0xce6   :  { %v1795_v20 = vsel %vm1792_vm10, %v1794_v55, %v1790_v0 }
 0xce7   :  { %v1798_v61 = vmul.f32 %v1795_v20, %v3264_v14 }
 0xd2c   :  { %v1801_v57 = vpop.permute.xlu2 %1800 }
 0xd2d   :  { %v1803_v59 = vmul.f32 %v1801_v57, %v1795_v20 }
 0xd2f   :  { %1805 = vrot.lane.b32.xlu0 %v1803_v59, %s2808_s10  ;;  %v391_v59 = vadd.f32 %v3185_v15, %v3090_v58 }
 0xda1   :  { %v1806_v1 = vpop.permute.xlu0 %1805 }
 0xda2   :  { %v3298_v56 = vadd.f32 %v1806_v1, %v1798_v61 }
 0xda4   :  { %2788 = vtanh.f32 %v3298_v56 }
 0xdaa   :  { %v2789_v26 = vpop.eup %2788 }
 0xdab   :  { %1811 = vrot.lane.b32.xlu1 %v2789_v26, %s2807_s3 }
 0xe1d   :  { %v1812_v37 = vpop.permute.xlu1 %1811 }
 0xe1e   :  { %v1814_v3 = vmul.f32 %v1812_v37, %v1795_v20  ;;  %v442_v37 = vadd.f32 %v3188_v41, %v391_v59 }
 0xe20   :  { %1816 = vrot.lane.b32.xlu2 %v1814_v3, %s2808_s10 }
 0xe7a   :  { %v1817_v8 = vpop.permute.xlu2 %1816 }
 0xe7b   :  { %v1818_v12 = vsel %vm448_vm5, %v1817_v8, 0 }
 0xe7c   :  { %v1840_v13 = vand.u32 4294901760, %v1818_v12 }
 0xe7e   :  { %v1841_v11 = vsub.f32 %v1818_v12, %v1840_v13  ;;  %1886 = vmatmul.f32.vlgmr.msrb.gmra.mxu1 %v1840_v13 }
 0xe7f   :  { %2161 = vmatpush.msrb.mxu1 %v2877_v10 }
 0xe80   :  { %v1842_v14 = vand.u32 4294901760, %v1841_v11  ;;  %1916 = vmatmul.f32.vlgmr.msra.gmra.mxu2 %v1841_v11 }
 0xe81   :  { %2163 = vmatpush.msrb.mxu1 %v2891_v19  ;;  %2190 = vmatpush.msra.mxu2 %v2897_v24 }
 0xe82   :  { %v1843_v33 = vsub.f32 %v1841_v11, %v1842_v14  ;;  %1943 = vmatmul.f32.vlgmr.msra.gmra.mxu3 %v1842_v14 }
 0xe83   :  { %2165 = vmatpush.msrb.mxu1 %v2921_v40  ;;  %2221 = vmatpush.msra.mxu3 %v2877_v10 }
 0xe84   :  { %v1844_v21 = vand.u32 4294901760, %v1843_v33  ;;  %2194 = vmatpush.msra.mxu2 %v2907_v32 }
 0xe85   :  { %2167 = vmatpush.msrb.mxu1 %v2962_v60  ;;  %2223 = vmatpush.msra.mxu3 %v2891_v19 }
 0xe86   :  { %1845 = vmatmul.f32.vlgmr.msrb.gmra.mxu0 %v1844_v21  ;;  %2001 = vmatmul.f32.vlgmr.msra.gmra.mxu1 %v1840_v13 }
 0xe87   :  { %2132 = vmatpush.msrb.mxu0 %v2888_v17  ;;  %2225 = vmatpush.msra.mxu3 %v2921_v40 }
 0xe88   :  { %2198 = vmatpush.msra.mxu2 %v2935_v46 }
 0xe89   :  { %2135 = vmatpush.msrb.mxu0 %v2900_v25  ;;  %2227 = vmatpush.msra.mxu3 %v2962_v60 }
 0xe8a   :  { %2202 = vmatpush.msra.mxu2 %v2976_v2 }
 0xe8b   :  { %2138 = vmatpush.msrb.mxu0 %v2930_v45 }
 0xe8d   :  { %2141 = vmatpush.msrb.mxu0 %v2969_v62 }
 0xe8e   :  { %1976 = vmatmul.f32.vlgmr.msra.gmra.mxu0 %v1840_v13 }
 0xefb   :  { %v1887_v10 = vpop.f32.mrf.mxu1 }
 0xf03   :  { %v1846_v19 = vpop.f32.mrf.mxu0  ;;  %v1917_v32 = vpop.f32.mrf.mxu2 }
 0xf04   :  { %v1888_v24 = vadd.f32 %v1887_v10, %v1846_v19  ;;  %v2002_v9 = vpop.f32.mrf.mxu1 }
 0xf05   :  { %v1944_v22 = vpop.f32.mrf.mxu3 }
 0xf06   :  { %v1918_v17 = vadd.f32 %v1917_v32, %v1888_v24 }
 0xf08   :  { %v1945_v40 = vadd.f32 %v1944_v22, %v1918_v17 }
 0xf0b   :  { %v1977_v23 = vpop.f32.mrf.mxu0 }
 0xf0c   :  { %v1978_v46 = vadd.f32 %v1977_v23, %v1945_v40 }
 0xf0e   :  { %v2003_v25 = vadd.f32 %v2002_v9, %v1978_v46 }
 0xf10   :  { %v2005_v60 = vadd.f32 %v2003_v25, %v3109_v4 }
 0xf12   :  { %2790 = vtanh.f32 %v2005_v60  ;;  %v2734_v45 = vmul.f32 -1.442695, %v2005_v60  ;;  %v2274_v60 = vld [vmem:[%s3423_s4 + $0x18] sm:$0xff] }
 0xf14   :  { %2792 = vpow2.f32 %v2734_v45  ;;  %v2296_v45 = vand.u32 4294901760, %v2274_v60 }
 0xf16   :  { %2297 = vmatpush.msra.mxu0 %v2296_v45 }
 0xf18   :  { %v2791_v2 = vpop.eup %2790 }
 0xf19   :  { %2028 = vrot.lane.b32.xlu0 %v2791_v2, %s2807_s3  ;;  %v2273_v2 = vld [vmem:[%s3423_s4 + $0x10] sm:$0xff] }
 0xf1a   :  { %v2793_v62 = vpop.eup %2792 }
 0xf1b   :  { %v2009_v34 = vadd.f32 1.0, %v2793_v62  ;;  %v2298_v62 = vand.u32 4294901760, %v2273_v2 }
 0xf1d   :  { %2794 = vrcp.f32 %v2009_v34  ;;  %v2021_v43 = vand.u32 2147483648, %v2009_v34  ;;  %vm2015_vm12 = vweird.f32 %v2009_v34  ;;  %v2019_v29 = vand.u32 2147483647, %v2009_v34  ;;  %2299 = vmatpush.msra.mxu0 %v2298_v62 }
 0xf1f   :  { %v2022_v42 = vor.u32 1.1754944e-38, %v2021_v43  ;;  %vm2020_vm14 = vcmp.eq.f32.partialorder %v2019_v29, 8.507059e+37 }
 0xf23   :  { %v2795_v16 = vpop.eup %2794 }
 0xf24   :  { %v2011_v27 = vmul.f32 %v2795_v16, %v2009_v34  ;;  %vm2016_vm11 = vweird.f32 %v2795_v16  ;;  %v2326_v34 = vsub.f32 %v2274_v60, %v2296_v45 }
 0xf25   :  { %vm2017_vm13 = vmor %vm2015_vm12, %vm2016_vm11 }
 0xf26   :  { %v2012_v18 = vsub.f32 1.0, %v2011_v27  ;;  %v2327_v27 = vand.u32 4294901760, %v2326_v34 }
 0xf28   :  { %v2013_v36 = vmul.f32 %v2795_v16, %v2012_v18 }
 0xf2a   :  { %v2014_v63 = vadd.f32 %v2795_v16, %v2013_v36  ;;  %v2328_v36 = vsub.f32 %v2326_v34, %v2327_v27 }
 0xf2c   :  { %v2018_v4 = vsel %vm2017_vm13, %v2795_v16, %v2014_v63  ;;  %v2332_v16 = vsub.f32 %v2273_v2, %v2298_v62  ;;  %v2329_v43 = vand.u32 4294901760, %v2328_v36  ;;  %v2470_v2 = vld [vmem:[%s3425_s6] sm:$0xff] }
 0xf2d   :  { %v2023_v52 = vsel %vm2020_vm14, %v2022_v42, %v2018_v4 }
 0xf2e   :  { %v2026_v31 = vmul.f32 %v2023_v52, %v3298_v56  ;;  %v2333_v18 = vand.u32 4294901760, %v2332_v16  ;;  %2330 = vmatpush.msra.mxu1 %v2329_v43 }
 0xf30   :  { %v2334_v63 = vsub.f32 %v2332_v16, %v2333_v18 }
 0xf32   :  { %v2335_v29 = vand.u32 4294901760, %v2334_v63 }
 0xf34   :  { %2336 = vmatpush.msra.mxu1 %v2335_v29 }
 0xf8b   :  { %v2029_v30 = vpop.permute.xlu0 %2028 }
 0xf8c   :  { %v2031_v44 = vmul.f32 %v2029_v30, %v2023_v52  ;;  %v2272_v30 = vld [vmem:[%s3423_s4 + $0x8] sm:$0xff] }
 0xf8e   :  { %2033 = vrot.lane.b32.xlu1 %v2031_v44, %s2808_s10  ;;  %v2271_v44 = vld [vmem:[%s3423_s4] sm:$0xff] }
0x1000   :  { %v2034_v47 = vpop.permute.xlu1 %2033 }
0x1001   :  { %v2036_v28 = vadd.f32 %v2034_v47, %v2026_v31  ;;  %v2302_v47 = vand.u32 4294901760, %v2271_v44 }
0x1003   :  { %2796 = vtanh.f32 %v2036_v28 }
0x1009   :  { %v2797_v7 = vpop.eup %2796 }
0x100a   :  { %2039 = vrot.lane.b32.xlu2 %v2797_v7, %s2807_s3  ;;  %v2344_v7 = vsub.f32 %v2271_v44, %v2302_v47 }
0x1064   :  { %v2040_v5 = vpop.permute.xlu2 %2039 }
0x1065   :  { %v2042_v48 = vmul.f32 %v2040_v5, %v2023_v52  ;;  %v2300_v52 = vand.u32 4294901760, %v2272_v30 }
0x1067   :  { %2044 = vrot.lane.b32.xlu0 %v2042_v48, %s2808_s10  ;;  %v2338_v31 = vsub.f32 %v2272_v30, %v2300_v52  ;;  %2301 = vmatpush.msra.mxu0 %v2300_v52  ;;  %v2345_v48 = vand.u32 4294901760, %v2344_v7 }
0x1069   :  { %2303 = vmatpush.msra.mxu0 %v2302_v47 }
0x10d9   :  { %v2045_v53 = vpop.permute.xlu0 %2044 }
0x10da   :  { %v2046_v35 = vsel %vm448_vm5, %v2045_v53, 0 }
0x10db   :  { %v2068_v49 = vand.u32 4294901760, %v2046_v35 }
0x10dd   :  { %v2069_v38 = vsub.f32 %v2046_v35, %v2068_v49  ;;  %2114 = vmatmul.f32.vlgmr.msrb.gmra.mxu3 %v2068_v49  ;;  %v2346_v35 = vsub.f32 %v2344_v7, %v2345_v48 }
0x10de   :  { %2397 = vmatpush.msrb.mxu3 %v2296_v45 }
0x10df   :  { %v2070_v39 = vand.u32 4294901760, %v2069_v38  ;;  %2144 = vmatmul.f32.vlgmr.msrb.gmra.mxu0 %v2069_v38 }
0x10e0   :  { %2399 = vmatpush.msrb.mxu3 %v2298_v62  ;;  %2426 = vmatpush.msrb.mxu0 %v2327_v27 }
0x10e1   :  { %v2071_v50 = vsub.f32 %v2069_v38, %v2070_v39  ;;  %2171 = vmatmul.f32.vlgmr.msrb.gmra.mxu1 %v2070_v39 }
0x10e2   :  { %2401 = vmatpush.msrb.mxu3 %v2300_v52  ;;  %2430 = vmatpush.msrb.mxu0 %v2333_v18 }
0x10e3   :  { %v2072_v6 = vand.u32 4294901760, %v2071_v50 }
0x10e4   :  { %2403 = vmatpush.msrb.mxu3 %v2302_v47 }
0x10e5   :  { %2073 = vmatmul.f32.vlgmr.msrb.gmra.mxu2 %v2072_v6  ;;  %2229 = vmatmul.f32.vlgmr.msra.gmra.mxu3 %v2068_v49 }
0x10e6   :  { %2368 = vmatpush.msrb.mxu2 %v2326_v34 }
0x10e8   :  { %2371 = vmatpush.msrb.mxu2 %v2332_v16  ;;  %v2508_v16 = vand.u32 4294901760, %v2470_v2 }
0x10ea   :  { %2374 = vmatpush.msrb.mxu2 %v2338_v31  ;;  %v2570_v63 = vsub.f32 %v2470_v2, %v2508_v16 }
0x10ec   :  { %2377 = vmatpush.msrb.mxu2 %v2344_v7 }
0x10ed   :  { %2204 = vmatmul.f32.vlgmr.msra.gmra.mxu2 %v2068_v49  ;;  %v2347_v49 = vand.u32 4294901760, %v2346_v35 }
0x115c   :  { %v2145_v55 = vpop.f32.mrf.mxu0 }
0x115e   :  { %v2172_v20 = vpop.f32.mrf.mxu1 }
0x1160   :  { %v2115_v54 = vpop.f32.mrf.mxu3 }
0x1168   :  { %v2074_v51 = vpop.f32.mrf.mxu2  ;;  %v2230_v26 = vpop.f32.mrf.mxu3 }
0x1169   :  { %v2116_v0 = vadd.f32 %v2115_v54, %v2074_v51 }
0x116b   :  { %v2146_v57 = vadd.f32 %v2145_v55, %v2116_v0  ;;  %v2477_v55 = vld [vmem:[%s3425_s6 + $0x38] sm:$0xff] }
0x116d   :  { %v2173_v61 = vadd.f32 %v2172_v20, %v2146_v57  ;;  %v3350_v57 = vand.u32 4294901760, %v2477_v55  ;;  %v2476_v20 = vld [vmem:[%s3425_s6 + $0x30] sm:$0xff] }
0x116f   :  { %v3356_v59 = vsub.f32 %v2477_v55, %v3350_v57  ;;  %2495 = vmatpush.msra.mxu2 %v3350_v57 }
0x1170   :  { %v2205_v1 = vpop.f32.mrf.mxu2 }
0x1171   :  { %v2206_v56 = vadd.f32 %v2205_v1, %v2173_v61  ;;  %v3358_v61 = vand.u32 4294901760, %v2476_v20  ;;  %v2475_v1 = vld [vmem:[%s3425_s6 + $0x28] sm:$0xff] }
0x1173   :  { %v2231_v3 = vadd.f32 %v2230_v26, %v2206_v56  ;;  %v2529_v56 = vand.u32 4294901760, %v3356_v59  ;;  %v3367_v26 = vsub.f32 %v2476_v20, %v3358_v61  ;;  %2497 = vmatpush.msra.mxu2 %v3358_v61 }
0x1175   :  { %v2233_v8 = vadd.f32 %v2231_v3, %v442_v37  ;;  %v3369_v37 = vand.u32 4294901760, %v2475_v1  ;;  %v2474_v3 = vld [vmem:[%s3425_s6 + $0x20] sm:$0xff] }
0x1177   :  { %2798 = vtanh.f32 %v2233_v8  ;;  %v2735_v13 = vmul.f32 -1.442695, %v2233_v8  ;;  %v2530_v8 = vsub.f32 %v3356_v59, %v2529_v56  ;;  %2499 = vmatpush.msra.mxu2 %v3369_v37 }
0x1179   :  { %2800 = vpow2.f32 %v2735_v13  ;;  %v3380_v13 = vsub.f32 %v2475_v1, %v3369_v37 }
0x117d   :  { %v2799_v12 = vpop.eup %2798 }
0x117e   :  { %2256 = vrot.lane.b32.xlu1 %v2799_v12, %s2807_s3  ;;  %v2535_v12 = vand.u32 4294901760, %v3367_v26 }
0x117f   :  { %v2801_v11 = vpop.eup %2800 }
0x1180   :  { %v2237_v14 = vadd.f32 1.0, %v2801_v11  ;;  %v3382_v11 = vand.u32 4294901760, %v2474_v3 }
0x1182   :  { %2802 = vrcp.f32 %v2237_v14  ;;  %v2249_v19 = vand.u32 2147483648, %v2237_v14  ;;  %vm2243_vm0 = vweird.f32 %v2237_v14  ;;  %v2247_v41 = vand.u32 2147483647, %v2237_v14  ;;  %2501 = vmatpush.msra.mxu2 %v3382_v11 }
0x1184   :  { %v2250_v32 = vor.u32 1.1754944e-38, %v2249_v19  ;;  %vm2248_vm2 = vcmp.eq.f32.partialorder %v2247_v41, 8.507059e+37  ;;  %v2472_v19 = vld [vmem:[%s3425_s6 + $0x10] sm:$0xff] }
0x1188   :  { %v2803_v33 = vpop.eup %2802 }
0x1189   :  { %v2239_v21 = vmul.f32 %v2803_v33, %v2237_v14  ;;  %vm2244_vm15 = vweird.f32 %v2803_v33  ;;  %v2473_v14 = vld [vmem:[%s3425_s6 + $0x18] sm:$0xff] }
0x118a   :  { %vm2245_vm1 = vmor %vm2243_vm0, %vm2244_vm15 }
0x118b   :  { %v2240_v58 = vsub.f32 1.0, %v2239_v21  ;;  %v2536_v21 = vsub.f32 %v3367_v26, %v2535_v12 }
0x118d   :  { %v2241_v15 = vmul.f32 %v2803_v33, %v2240_v58  ;;  %v2541_v58 = vand.u32 4294901760, %v3380_v13  ;;  %v2537_v41 = vand.u32 4294901760, %v2536_v21 }
0x118f   :  { %v2242_v10 = vadd.f32 %v2803_v33, %v2241_v15  ;;  %v2546_v15 = vsub.f32 %v2474_v3, %v3382_v11 }
0x1191   :  { %v2246_v24 = vsel %vm2245_vm1, %v2803_v33, %v2242_v10  ;;  %v2531_v33 = vand.u32 4294901760, %v2530_v8  ;;  %v2502_v10 = vand.u32 4294901760, %v2473_v14 }
0x1192   :  { %v2251_v22 = vsel %vm2248_vm2, %v2250_v32, %v2246_v24  ;;  %v2542_v24 = vsub.f32 %v3380_v13, %v2541_v58  ;;  %v2547_v32 = vand.u32 4294901760, %v2546_v15 }
0x1193   :  { %v2254_v23 = vmul.f32 %v2251_v22, %v2036_v28  ;;  %v2339_v28 = vand.u32 4294901760, %v2338_v31  ;;  %2532 = vmatpush.msra.mxu3 %v2531_v33  ;;  %2503 = vmatpush.msra.mxu2 %v2502_v10 }
0x1195   :  { %v2340_v5 = vsub.f32 %v2338_v31, %v2339_v28  ;;  %2434 = vmatpush.msrb.mxu0 %v2339_v28  ;;  %2538 = vmatpush.msra.mxu3 %v2537_v41  ;;  %v2740_v31 = vld [vmem:[%s3424_s5] ss:$0 sm:$0xff] }
0x1197   :  { %v2341_v53 = vand.u32 4294901760, %v2340_v5  ;;  %2438 = vmatpush.msrb.mxu0 %v2345_v48 }
0x1199   :  { %2342 = vmatpush.msra.mxu1 %v2341_v53 }
0x119b   :  { %2348 = vmatpush.msra.mxu1 %v2347_v49 }
0x119d   :  { %2457 = vmatpush.msrb.mxu1 %v2296_v45 }
0x119f   :  { %2459 = vmatpush.msrb.mxu1 %v2298_v62 }
0x11a1   :  { %2461 = vmatpush.msrb.mxu1 %v2300_v52 }
0x11a3   :  { %2463 = vmatpush.msrb.mxu1 %v2302_v47 }
0x11f0   :  { %v2257_v17 = vpop.permute.xlu1 %2256 }
0x11f1   :  { %v2259_v40 = vmul.f32 %v2257_v17, %v2251_v22  ;;  %v2504_v17 = vand.u32 4294901760, %v2472_v19 }
0x11f3   :  { %2261 = vrot.lane.b32.xlu2 %v2259_v40, %s2808_s10  ;;  %v2471_v40 = vld [vmem:[%s3425_s6 + $0x8] sm:$0xff]  ;;  %2505 = vmatpush.msra.mxu2 %v2504_v17 }
0x124d   :  { %v2262_v46 = vpop.permute.xlu2 %2261 }
0x124e   :  { %v2264_v9 = vadd.f32 %v2262_v46, %v2254_v23  ;;  %v2543_v23 = vand.u32 4294901760, %v2542_v24  ;;  %v2548_v46 = vsub.f32 %v2546_v15, %v2547_v32 }
0x1250   :  { %2804 = vtanh.f32 %v2264_v9  ;;  %v2558_v9 = vsub.f32 %v2472_v19, %v2504_v17  ;;  %2544 = vmatpush.msra.mxu3 %v2543_v23  ;;  %v2549_v45 = vand.u32 4294901760, %v2548_v46 }
0x1252   :  { %v2559_v62 = vand.u32 4294901760, %v2558_v9  ;;  %2550 = vmatpush.msra.mxu3 %v2549_v45 }
0x1254   :  { %v2560_v18 = vsub.f32 %v2558_v9, %v2559_v62 }
0x1256   :  { %v2805_v25 = vpop.eup %2804  ;;  %v2561_v29 = vand.u32 4294901760, %v2560_v18 }
0x1257   :  { %2267 = vrot.lane.b32.xlu0 %v2805_v25, %s2807_s3  ;;  %v2506_v25 = vand.u32 4294901760, %v2471_v40 }
0x1259   :  { %v2564_v34 = vsub.f32 %v2471_v40, %v2506_v25  ;;  %2507 = vmatpush.msra.mxu2 %v2506_v25 }
0x125b   :  { %v2565_v36 = vand.u32 4294901760, %v2564_v34  ;;  %2509 = vmatpush.msra.mxu2 %v2508_v16 }
0x12c9   :  { %v2268_v4 = vpop.permute.xlu0 %2267 }
0x12ca   :  { %v2270_v42 = vmul.f32 %v2268_v4, %v2251_v22  ;;  %v2552_v22 = vsub.f32 %v2473_v14, %v2502_v10  ;;  %v2566_v4 = vsub.f32 %v2564_v34, %v2565_v36 }
0x12cc   :  { %2280 = vrot.lane.b32.xlu1 %v2270_v42, %s2808_s10  ;;  %v2553_v60 = vand.u32 4294901760, %v2552_v22  ;;  %v2571_v42 = vand.u32 4294901760, %v2570_v63  ;;  %v2567_v30 = vand.u32 4294901760, %v2566_v4 }
0x12ce   :  { %v2554_v27 = vsub.f32 %v2552_v22, %v2553_v60  ;;  %v2572_v52 = vsub.f32 %v2570_v63, %v2571_v42 }
0x12d0   :  { %v2555_v43 = vand.u32 4294901760, %v2554_v27  ;;  %v2573_v44 = vand.u32 4294901760, %v2572_v52 }
0x12d2   :  { %2556 = vmatpush.msra.mxu3 %v2555_v43 }
0x12d4   :  { %2562 = vmatpush.msra.mxu3 %v2561_v29 }
0x12d6   :  { %2568 = vmatpush.msra.mxu3 %v2567_v30 }
0x12d8   :  { %2574 = vmatpush.msra.mxu3 %v2573_v44 }
0x133e   :  { %v2281_v38 = vpop.permute.xlu1 %2280 }
0x133f   :  { %v2282_v39 = vsel %vm448_vm5, %v2281_v38, 0  ;;  %vm2482_vm5 = vcmask 523264  }
0x1340   :  { %v2304_v50 = vand.u32 4294901760, %v2282_v39 }
0x1342   :  { %v2305_v6 = vsub.f32 %v2282_v39, %v2304_v50  ;;  %2350 = vmatmul.f32.vlgmr.msra.gmra.mxu1 %v2304_v50 }
0x1343   :  { %2627 = vmatpush.msra.mxu1 %v3350_v57 }
0x1344   :  { %v2306_v54 = vand.u32 4294901760, %v2305_v6  ;;  %2380 = vmatmul.f32.vlgmr.msrb.gmra.mxu2 %v2305_v6 }
0x1345   :  { %2629 = vmatpush.msra.mxu1 %v3358_v61  ;;  %2660 = vmatpush.msrb.mxu2 %v2529_v56 }
0x1346   :  { %v2307_v51 = vsub.f32 %v2305_v6, %v2306_v54  ;;  %2407 = vmatmul.f32.vlgmr.msrb.gmra.mxu3 %v2306_v54 }
0x1347   :  { %2631 = vmatpush.msra.mxu1 %v3369_v37  ;;  %2664 = vmatpush.msrb.mxu2 %v2535_v12 }
0x1348   :  { %v2308_v0 = vand.u32 4294901760, %v2307_v51  ;;  %2703 = vmatpush.msrb.mxu3 %v3350_v57 }
0x1349   :  { %2633 = vmatpush.msra.mxu1 %v3382_v11  ;;  %2668 = vmatpush.msrb.mxu2 %v2541_v58 }
0x134a   :  { %2309 = vmatmul.f32.vlgmr.msra.gmra.mxu0 %v2308_v0  ;;  %2465 = vmatmul.f32.vlgmr.msrb.gmra.mxu1 %v2304_v50 }
0x134b   :  { %2590 = vmatpush.msra.mxu0 %v3356_v59  ;;  %2635 = vmatpush.msra.mxu1 %v2502_v10 }
0x134c   :  { %2672 = vmatpush.msrb.mxu2 %v2547_v32  ;;  %2705 = vmatpush.msrb.mxu3 %v3358_v61  ;;  %v2741_v61 = vld [vmem:[%s3426_s7] ss:$0 sm:$0xff] }
0x134d   :  { %2593 = vmatpush.msra.mxu0 %v3367_v26  ;;  %2637 = vmatpush.msra.mxu1 %v2504_v17 }
0x134e   :  { %2676 = vmatpush.msrb.mxu2 %v2553_v60  ;;  %2707 = vmatpush.msrb.mxu3 %v3369_v37 }
0x134f   :  { %2596 = vmatpush.msra.mxu0 %v3380_v13  ;;  %2639 = vmatpush.msra.mxu1 %v2506_v25 }
0x1350   :  { %2680 = vmatpush.msrb.mxu2 %v2559_v62  ;;  %2709 = vmatpush.msrb.mxu3 %v3382_v11 }
0x1351   :  { %2599 = vmatpush.msra.mxu0 %v2546_v15  ;;  %2641 = vmatpush.msra.mxu1 %v2508_v16 }
0x1352   :  { %2440 = vmatmul.f32.vlgmr.msrb.gmra.mxu0 %v2304_v50  ;;  %2684 = vmatpush.msrb.mxu2 %v2565_v36 }
0x1353   :  { %2602 = vmatpush.msra.mxu0 %v2552_v22  ;;  %2711 = vmatpush.msrb.mxu3 %v2502_v10 }
0x1354   :  { %2688 = vmatpush.msrb.mxu2 %v2571_v42 }
0x1355   :  { %2605 = vmatpush.msra.mxu0 %v2558_v9  ;;  %2713 = vmatpush.msrb.mxu3 %v2504_v17 }
0x1357   :  { %2608 = vmatpush.msra.mxu0 %v2564_v34  ;;  %2715 = vmatpush.msrb.mxu3 %v2506_v25 }
0x1359   :  { %2611 = vmatpush.msra.mxu0 %v2570_v63  ;;  %2717 = vmatpush.msrb.mxu3 %v2508_v16 }
0x13bf   :  { %v2351_v47 = vpop.f32.mrf.mxu1 }
0x13c7   :  { %v2310_v28 = vpop.f32.mrf.mxu0  ;;  %v2381_v48 = vpop.f32.mrf.mxu2 }
0x13c8   :  { %v2311_v7 = vadd.f32 %v2740_v31, %v2310_v28  ;;  %v2466_v50 = vpop.f32.mrf.mxu1 }
0x13c9   :  { %v2408_v35 = vpop.f32.mrf.mxu3 }
0x13ca   :  { %v2352_v5 = vadd.f32 %v2351_v47, %v2311_v7 }
0x13cc   :  { %v2382_v53 = vadd.f32 %v2381_v48, %v2352_v5 }
0x13ce   :  { %v2409_v49 = vadd.f32 %v2408_v35, %v2382_v53 }
0x13cf   :  { %v2441_v38 = vpop.f32.mrf.mxu0 }
0x13d0   :  { %v2442_v39 = vadd.f32 %v2441_v38, %v2409_v49 }
0x13d2   :  { %v2467_v6 = vadd.f32 %v2466_v50, %v2442_v39 }
0x13d4   :  { %v2469_v54 = vmax.f32 %v2467_v6, 0.0 }
0x13d6   :  { %v2484_v51 = vsel %vm2482_vm5, %v2469_v54, 0 }
0x13d7   :  { %v2510_v0 = vand.u32 4294901760, %v2484_v51 }
0x13d9   :  { %v2511_v55 = vsub.f32 %v2484_v51, %v2510_v0  ;;  %2576 = vmatmul.f32.vlgmr.msra.gmra.mxu3 %v2510_v0 }
0x13db   :  { %v2512_v57 = vand.u32 4294901760, %v2511_v55  ;;  %2614 = vmatmul.f32.vlgmr.msra.gmra.mxu0 %v2511_v55 }
0x13dd   :  { %v2513_v20 = vsub.f32 %v2511_v55, %v2512_v57  ;;  %2645 = vmatmul.f32.vlgmr.msra.gmra.mxu1 %v2512_v57 }
0x13df   :  { %v2514_v59 = vand.u32 4294901760, %v2513_v20 }
0x13e1   :  { %2515 = vmatmul.f32.vlgmr.msra.gmra.mxu2 %v2514_v59  ;;  %2719 = vmatmul.f32.vlgmr.msrb.gmra.mxu3 %v2510_v0 }
0x13e9   :  { %2690 = vmatmul.f32.vlgmr.msrb.gmra.mxu2 %v2510_v0 }
0x1458   :  { %v2615_v3 = vpop.f32.mrf.mxu0 }
0x145a   :  { %v2646_v12 = vpop.f32.mrf.mxu1 }
0x145c   :  { %v2577_v1 = vpop.f32.mrf.mxu3 }
0x1464   :  { %v2516_v56 = vpop.f32.mrf.mxu2  ;;  %v2720_v33 = vpop.f32.mrf.mxu3 }
0x1465   :  { %v2517_v26 = vadd.f32 %v2741_v61, %v2516_v56 }
0x1467   :  { %v2578_v37 = vadd.f32 %v2577_v1, %v2517_v26 }
0x1469   :  { %v2616_v8 = vadd.f32 %v2615_v3, %v2578_v37 }
0x146b   :  { %v2647_v13 = vadd.f32 %v2646_v12, %v2616_v8 }
0x146c   :  { %v2691_v11 = vpop.f32.mrf.mxu2 }
0x146d   :  { %v2692_v14 = vadd.f32 %v2691_v11, %v2647_v13 }
0x146f   :  { %v2721_v21 = vadd.f32 %v2720_v33, %v2692_v14 }
0x1471   :  { %2723 = vst [vmem:[%s3427_s8] sm:$0xff] %v2721_v21 }

</bundles_post_ra>
